<compile_context>
chip_gen: v7x
topology: tpu7x:2x2x1
jax: 0.10.0
libtpu: 0.0.40
codegen_flags: <defaults>
</compile_context>

<pallas_src>
import math

import jax
import jax.numpy as jnp
from jax import lax
from jax.experimental import pallas as pl
from jax.experimental.pallas import tpu as pltpu


# -----------------------------------------------------------------------------
# Fused multi-head attention kernel
# -----------------------------------------------------------------------------
def _mha_fast_kernel(x_ref, wq_ref, wk_ref, wv_ref, wd_ref, o_ref,
                     k_cache, v_cache):
    # x_ref   : (1, HW, C)          bf16  full spatial slab (block index depends on b only)
    # wq_ref  : (C, n_heads*D)      bf16  1/sqrt(D) folded in
    # wk_ref  : (C, n_heads*D)      bf16
    # wv_ref  : (C, n_heads*D)      bf16
    # wd_ref  : (n_heads, Cout, D)  bf16  per-head decode weight, 1/(H*W) folded in
    # o_ref   : (1, Cout, tq)       bf16  lane-dense output tile
    # k_cache : (n_heads, HW, D)    bf16  scratch, filled once per batch element
    # v_cache : (n_heads, HW, D)    bf16  scratch, filled once per batch element
    qi = pl.program_id(1)
    tq = o_ref.shape[2]
    n_heads, cout, d = wd_ref.shape

    # ---- K/V projections for all heads, once per batch element (qi == 0). ----
    @pl.when(qi == 0)
    def _fill_kv_cache():
        x_all = x_ref[0]                                             # (HW, C) bf16
        k_all = jnp.dot(x_all, wk_ref[...],
                        preferred_element_type=jnp.float32)          # (HW, n_heads*D)
        v_all = jnp.dot(x_all, wv_ref[...],
                        preferred_element_type=jnp.float32)
        for h in range(n_heads):                                     # static loop
            k_cache[h] = k_all[:, h * d:(h + 1) * d].astype(k_cache.dtype)
            v_cache[h] = v_all[:, h * d:(h + 1) * d].astype(v_cache.dtype)

    # ---- Q projection for this q-tile, all heads in one full-width matmul. ---
    xq = x_ref[0, pl.ds(pl.multiple_of(qi * tq, tq), tq), :]         # (tq, C) bf16
    q_all = jnp.dot(xq, wq_ref[...],
                    preferred_element_type=jnp.float32)              # (tq, n_heads*D)
    q_all = q_all.astype(jnp.bfloat16)                               # scale already in wq

    # ---- Per-head attention + decode accumulation (static head loop; note
    #      static Python loops don't bound live ranges, n_heads is small). -----
    out_acc = None                                                   # (Cout, tq) f32
    for h in range(n_heads):
        q = q_all[:, h * d:(h + 1) * d]                              # (tq, D) bf16
        k = k_cache[h]                                               # (HW, D) bf16
        v = v_cache[h]                                               # (HW, D) bf16

        # Q @ K^T: contract the D dims directly (no transposed K copy).
        aff = lax.dot_general(q, k, (((1,), (1,)), ((), ())),
                              preferred_element_type=jnp.float32)    # (tq, HW) f32

        m = jnp.max(aff, axis=-1, keepdims=True)                     # f32 stats
        p = jnp.exp((aff - m).astype(jnp.bfloat16))                  # bf16 EUP exp
        denom = jnp.sum(p.astype(jnp.float32), axis=-1, keepdims=True)

        # Unnormalized P @ V; normalization deferred to the small (tq, D) slab.
        att = jnp.dot(p, v, preferred_element_type=jnp.float32)      # (tq, D) f32
        att = att * pl.reciprocal(denom, approx=True)

        # Per-head decode: (Cout, D) x (tq, D)^T -> (Cout, tq), accumulated f32.
        contrib = lax.dot_general(wd_ref[h], att.astype(jnp.bfloat16),
                                  (((1,), (1,)), ((), ())),
                                  preferred_element_type=jnp.float32)
        out_acc = contrib if out_acc is None else out_acc + contrib

    o_ref[0] = out_acc.astype(o_ref.dtype)


# -----------------------------------------------------------------------------
# VMEM-aware tiling helpers
# -----------------------------------------------------------------------------
def _vmem_capacity_bytes():
    # 128 MiB on v5e/v6e, 64 MiB per core on v7x; conservative fallback.
    try:
        return int(pltpu.get_tpu_info().vmem_capacity_bytes)
    except Exception:
        return 64 << 20


def _vmem_bytes_estimate(hw, c, n_heads, d, cout, tq):
    bf, f32, lane = 2, 4, 128
    d_pad = max(d, lane)                                  # lane padding of (.., D) caches
    x_slab = 2 * hw * c * bf                              # double-buffered x block
    weights = 2 * (3 * c * n_heads * d + n_heads * cout * d_pad) * bf
    out_blk = 2 * cout * max(tq, lane) * bf
    kv_cache = 2 * n_heads * hw * d_pad * bf              # K + V scratch
    proj_tmp = 2 * hw * n_heads * d * f32                 # f32 K/V projection temporaries
    soft_tmp = 2 * tq * hw * (f32 + bf)                   # aff (f32) + p (bf16), 2x slack
    return x_slab + weights + out_blk + kv_cache + proj_tmp + soft_tmp


def _pick_q_tile(hw, c, n_heads, d, cout, vmem_cap):
    divisible = [t for t in (512, 256, 128) if hw > t and hw % t == 0]
    if not divisible:
        # Small or irregular HW: single tile covering the whole spatial extent.
        # TODO(synk): flash-style KV-block tiling for large irregular HW.
        return hw
    budget = int(0.45 * vmem_cap)
    for t in divisible:                                   # largest tile that fits
        if _vmem_bytes_estimate(hw, c, n_heads, d, cout, t) <= budget:
            return t
    return divisible[-1]                                  # smallest candidate (128)


# -----------------------------------------------------------------------------
# Wrapper
# -----------------------------------------------------------------------------
def multi_headed_attention_fast(params, x_nchw):
    """Forward pass matching the PyTorch module; NCHW in, NCHW out (bf16)."""
    B, C, H, W = x_nchw.shape
    HW = H * W
    n_heads, _, D = params["wq"].shape          # (n_heads, C, D)
    Cout = params["wd"].shape[2]                # (n_heads, D, Cout)

    # Token-major bf16 activations.
    x_tok = jnp.transpose(x_nchw.reshape(B, C, HW), (0, 2, 1)).astype(jnp.bfloat16)

    # Batched projection weights (C, n_heads*D); scales folded in f32 pre-cast.
    def _flat(w):                               # (n_heads, C, D) -> (C, n_heads*D)
        return jnp.transpose(w, (1, 0, 2)).reshape(C, n_heads * D)

    wq = (_flat(params["wq"]) * (1.0 / math.sqrt(D))).astype(jnp.bfloat16)
    wk = _flat(params["wk"]).astype(jnp.bfloat16)
    wv = _flat(params["wv"]).astype(jnp.bfloat16)
    # Per-head decode weight as (n_heads, Cout, D) with the module's 1/(H*W) folded in.
    wd = (jnp.transpose(params["wd"], (0, 2, 1)) * (1.0 / HW)).astype(jnp.bfloat16)

    vmem_cap = _vmem_capacity_bytes()
    tq = _pick_q_tile(HW, C, n_heads, D, Cout, vmem_cap)
    n_q = HW // tq
    est = _vmem_bytes_estimate(HW, C, n_heads, D, Cout, tq)
    vmem_limit = min(int(0.9 * vmem_cap), max(32 << 20, int(1.25 * est)))

    out = pl.pallas_call(
        _mha_fast_kernel,
        out_shape=jax.ShapeDtypeStruct((B, Cout, HW), jnp.bfloat16),
        grid=(B, n_q),
        in_specs=[
            pl.BlockSpec((1, HW, C), lambda b, qi: (b, 0, 0)),
            pl.BlockSpec((C, n_heads * D), lambda b, qi: (0, 0)),
            pl.BlockSpec((C, n_heads * D), lambda b, qi: (0, 0)),
            pl.BlockSpec((C, n_heads * D), lambda b, qi: (0, 0)),
            pl.BlockSpec((n_heads, Cout, D), lambda b, qi: (0, 0, 0)),
        ],
        out_specs=pl.BlockSpec((1, Cout, tq), lambda b, qi: (b, 0, qi)),
        scratch_shapes=[
            pltpu.VMEM((n_heads, HW, D), jnp.bfloat16),   # K cache
            pltpu.VMEM((n_heads, HW, D), jnp.bfloat16),   # V cache
        ],
        compiler_params=pltpu.CompilerParams(
            # q-tile axis must be "arbitrary": the K/V cache filled at qi == 0 is
            # reused by later q-tiles of the same batch element.
            dimension_semantics=("parallel", "arbitrary"),
            vmem_limit_bytes=vmem_limit,
        ),
    )(x_tok, wq, wk, wv, wd)

    return out.reshape(B, Cout, H, W)           # pure reshape, no transpose pass


# -----------------------------------------------------------------------------
# Parameter construction (kaiming-uniform-like, deterministic)
# -----------------------------------------------------------------------------
def init_params(key, in_channels, value_channels, out_channels, n_heads):
    """Layouts chosen for token matmuls:
       wq/wk/wv: (n_heads, Cin, D)   (PyTorch stores (n_heads, D, Cin))
       wd      : (n_heads, D, Cout)  (PyTorch decode conv stores (Cout, n_heads*D, 1, 1))
    """
    kq, kk, kv, kd = jax.random.split(key, 4)

    def kaiming_uniform(k, shape, fan_in):
        gain = math.sqrt(2.0 / (1.0 + 5.0))       # a = sqrt(5), as in the module
        bound = math.sqrt(3.0) * gain / math.sqrt(fan_in)
        return jax.random.uniform(k, shape, jnp.float32, -bound, bound)

    wq = kaiming_uniform(kq, (n_heads, in_channels, value_channels), in_channels)
    wk = kaiming_uniform(kk, (n_heads, in_channels, value_channels), in_channels)
    wv = kaiming_uniform(kv, (n_heads, in_channels, value_channels), in_channels)
    wd = kaiming_uniform(kd, (n_heads, value_channels, out_channels),
                         n_heads * value_channels)
    return dict(wq=wq, wk=wk, wv=wv, wd=wd)


# -----------------------------------------------------------------------------
# Pure-JAX f32 reference (mirrors the PyTorch math) for a correctness check.
# -----------------------------------------------------------------------------
def _reference_forward(params, x_nchw):
    B, C, H, W = x_nchw.shape
    D = params["wq"].shape[2]
    Cout = params["wd"].shape[2]
    x = jnp.transpose(x_nchw.reshape(B, C, H * W), (0, 2, 1))        # (B, HW, C)
    q = jnp.einsum("bnc,hcd->bhnd", x, params["wq"])
    k = jnp.einsum("bnc,hcd->bhnd", x, params["wk"])
    v = jnp.einsum("bnc,hcd->bhnd", x, params["wv"])
    aff = jnp.einsum("bhnd,bhmd->bhnm", q, k) / math.sqrt(D)
    p = jax.nn.softmax(aff, axis=-1)
    att = jnp.einsum("bhnm,bhmd->bhnd", p, v) / (H * W)
    out = jnp.einsum("bhnd,hdo->bno", att, params["wd"])             # decode, no bias
    return jnp.transpose(out, (0, 2, 1)).reshape(B, Cout, H, W)


if __name__ == "__main__":
    key = jax.random.PRNGKey(0)
    k_param, k_x = jax.random.split(key)

    # Small shapes: batch=2, in_channels=8, value_channels=16, out_channels=8,
    # n_heads=2, spatial 16x16 (HW=256 -> two q-tiles of 128, exercising the
    # qi==0 cache-fill and qi==1 cache-reuse paths).
    in_channels, value_channels, out_channels, n_heads = 8, 16, 8, 2
    B, H, W = 2, 16, 16

    params = init_params(k_param, in_channels, value_channels, out_channels, n_heads)
    x = jax.random.normal(k_x, (B, in_channels, H, W), jnp.float32)

    out = multi_headed_attention_fast(params, x)
    out = jax.block_until_ready(out)
    assert out.shape == (B, out_channels, H, W)

    # bf16 MXU inputs, bf16 exp/output, approx reciprocal => norm-relative check.
    ref = _reference_forward(params, x)
    rel_err = jnp.linalg.norm(out.astype(jnp.float32) - ref) / jnp.linalg.norm(ref)
    assert rel_err < 4e-2, f"mismatch vs reference: rel_err={rel_err}"

    print("KERNEL_OK")
</pallas_src>

<mosaic_0001>
module attributes {stable_mosaic.version = 11 : i64} {
  func.func @_mha_fast_kernel(%arg0: i32, %arg1: i32, %arg2: memref<1x256x8xbf16, #tpu.memory_space<vmem>>, %arg3: memref<8x32xbf16, #tpu.memory_space<vmem>>, %arg4: memref<8x32xbf16, #tpu.memory_space<vmem>>, %arg5: memref<8x32xbf16, #tpu.memory_space<vmem>>, %arg6: memref<2x8x16xbf16, #tpu.memory_space<vmem>>, %arg7: memref<1x8x128xbf16, #tpu.memory_space<vmem>>, %arg8: memref<2x256x16xbf16, #tpu.memory_space<vmem>>, %arg9: memref<2x256x16xbf16, #tpu.memory_space<vmem>>) attributes {dimension_semantics = [#tpu.dimension_semantics<parallel>, #tpu.dimension_semantics<arbitrary>], iteration_bounds = array<i64: 2, 2>, scalar_prefetch = 0 : i64, scratch_operands = 2 : i64, tpu.core_type = #tpu.core_type<tc>, window_params = [{transform_indices = @transform_0, window_bounds = array<i64: 1, 256, 8>}, {pipeline_mode = #tpu.pipeline_mode<synchronous>, transform_indices = @transform_1, window_bounds = array<i64: 8, 32>}, {pipeline_mode = #tpu.pipeline_mode<synchronous>, transform_indices = @transform_2, window_bounds = array<i64: 8, 32>}, {pipeline_mode = #tpu.pipeline_mode<synchronous>, transform_indices = @transform_3, window_bounds = array<i64: 8, 32>}, {pipeline_mode = #tpu.pipeline_mode<synchronous>, transform_indices = @transform_4, window_bounds = array<i64: 2, 8, 16>}, {transform_indices = @transform_5, window_bounds = array<i64: 1, 8, 128>}]} {
    %c0_i32 = arith.constant 0 : i32
    %0 = arith.cmpi eq, %arg1, %c0_i32 : i32
    %1 = arith.extui %0 : i1 to i32
    %c0_i32_0 = arith.constant 0 : i32
    %2 = arith.cmpi ne, %1, %c0_i32_0 : i32
    scf.if %2 {
      %c0_34 = arith.constant 0 : index
      %c0_35 = arith.constant 0 : index
      %c0_36 = arith.constant 0 : index
      %62 = vector.load %arg2[%c0_34, %c0_35, %c0_36] : memref<1x256x8xbf16, #tpu.memory_space<vmem>>, vector<1x256x8xbf16>
      %63 = vector.shape_cast %62 : vector<1x256x8xbf16> to vector<256x8xbf16>
      %c0_37 = arith.constant 0 : index
      %c0_38 = arith.constant 0 : index
      %64 = vector.load %arg4[%c0_37, %c0_38] : memref<8x32xbf16, #tpu.memory_space<vmem>>, vector<8x32xbf16>
      %cst_39 = arith.constant dense<0.000000e+00> : vector<256x32xf32>
      %65 = tpu.matmul %63, %64, %cst_39 {dimension_numbers = #tpu.dot_dimension_numbers<[1], [0], [0], [1], [0, 0, 1, 1], [], []>} : vector<256x8xbf16>, vector<8x32xbf16>, vector<256x32xf32> -> vector<256x32xf32>
      %c0_40 = arith.constant 0 : index
      %c0_41 = arith.constant 0 : index
      %66 = vector.load %arg5[%c0_40, %c0_41] : memref<8x32xbf16, #tpu.memory_space<vmem>>, vector<8x32xbf16>
      %cst_42 = arith.constant dense<0.000000e+00> : vector<256x32xf32>
      %67 = tpu.matmul %63, %66, %cst_42 {dimension_numbers = #tpu.dot_dimension_numbers<[1], [0], [0], [1], [0, 0, 1, 1], [], []>} : vector<256x8xbf16>, vector<8x32xbf16>, vector<256x32xf32> -> vector<256x32xf32>
      %68 = vector.extract_strided_slice %65 {offsets = [0, 0], sizes = [256, 16], strides = [1, 1]} : vector<256x32xf32> to vector<256x16xf32>
      %69 = arith.truncf %68 : vector<256x16xf32> to vector<256x16xbf16>
      %c0_43 = arith.constant 0 : index
      %c0_44 = arith.constant 0 : index
      %c0_45 = arith.constant 0 : index
      %70 = vector.load %arg8[%c0_43, %c0_44, %c0_45] : memref<2x256x16xbf16, #tpu.memory_space<vmem>>, vector<1x256x16xbf16>
      %71 = vector.shape_cast %70 : vector<1x256x16xbf16> to vector<256x16xbf16>
      %72 = vector.shape_cast %69 : vector<256x16xbf16> to vector<1x256x16xbf16>
      tpu.vector_store %arg8[%c0_43, %c0_44, %c0_45], %72 {strides = array<i32>} : memref<2x256x16xbf16, #tpu.memory_space<vmem>>, vector<1x256x16xbf16>,
      %73 = vector.extract_strided_slice %67 {offsets = [0, 0], sizes = [256, 16], strides = [1, 1]} : vector<256x32xf32> to vector<256x16xf32>
      %74 = arith.truncf %73 : vector<256x16xf32> to vector<256x16xbf16>
      %c0_46 = arith.constant 0 : index
      %c0_47 = arith.constant 0 : index
      %c0_48 = arith.constant 0 : index
      %75 = vector.load %arg9[%c0_46, %c0_47, %c0_48] : memref<2x256x16xbf16, #tpu.memory_space<vmem>>, vector<1x256x16xbf16>
      %76 = vector.shape_cast %75 : vector<1x256x16xbf16> to vector<256x16xbf16>
      %77 = vector.shape_cast %74 : vector<256x16xbf16> to vector<1x256x16xbf16>
      tpu.vector_store %arg9[%c0_46, %c0_47, %c0_48], %77 {strides = array<i32>} : memref<2x256x16xbf16, #tpu.memory_space<vmem>>, vector<1x256x16xbf16>,
      %78 = vector.extract_strided_slice %65 {offsets = [0, 16], sizes = [256, 16], strides = [1, 1]} : vector<256x32xf32> to vector<256x16xf32>
      %79 = arith.truncf %78 : vector<256x16xf32> to vector<256x16xbf16>
      %c1_49 = arith.constant 1 : index
      %c0_50 = arith.constant 0 : index
      %c0_51 = arith.constant 0 : index
      %80 = vector.load %arg8[%c1_49, %c0_50, %c0_51] : memref<2x256x16xbf16, #tpu.memory_space<vmem>>, vector<1x256x16xbf16>
      %81 = vector.shape_cast %80 : vector<1x256x16xbf16> to vector<256x16xbf16>
      %82 = vector.shape_cast %79 : vector<256x16xbf16> to vector<1x256x16xbf16>
      tpu.vector_store %arg8[%c1_49, %c0_50, %c0_51], %82 {strides = array<i32>} : memref<2x256x16xbf16, #tpu.memory_space<vmem>>, vector<1x256x16xbf16>,
      %83 = vector.extract_strided_slice %67 {offsets = [0, 16], sizes = [256, 16], strides = [1, 1]} : vector<256x32xf32> to vector<256x16xf32>
      %84 = arith.truncf %83 : vector<256x16xf32> to vector<256x16xbf16>
      %c1_52 = arith.constant 1 : index
      %c0_53 = arith.constant 0 : index
      %c0_54 = arith.constant 0 : index
      %85 = vector.load %arg9[%c1_52, %c0_53, %c0_54] : memref<2x256x16xbf16, #tpu.memory_space<vmem>>, vector<1x256x16xbf16>
      %86 = vector.shape_cast %85 : vector<1x256x16xbf16> to vector<256x16xbf16>
      %87 = vector.shape_cast %84 : vector<256x16xbf16> to vector<1x256x16xbf16>
      tpu.vector_store %arg9[%c1_52, %c0_53, %c0_54], %87 {strides = array<i32>} : memref<2x256x16xbf16, #tpu.memory_space<vmem>>, vector<1x256x16xbf16>,
    } else {
    }
    %c128_i32 = arith.constant 128 : i32
    %3 = arith.muli %arg1, %c128_i32 : i32
    %4 = tpu.assume_multiple %3, 128 : i32
    %c0 = arith.constant 0 : index
    %5 = arith.index_cast %4 : i32 to index
    %c0_1 = arith.constant 0 : index
    %6 = vector.load %arg2[%c0, %5, %c0_1] : memref<1x256x8xbf16, #tpu.memory_space<vmem>>, vector<1x128x8xbf16>
    %7 = vector.shape_cast %6 : vector<1x128x8xbf16> to vector<128x8xbf16>
    %c0_2 = arith.constant 0 : index
    %c0_3 = arith.constant 0 : index
    %8 = vector.load %arg3[%c0_2, %c0_3] : memref<8x32xbf16, #tpu.memory_space<vmem>>, vector<8x32xbf16>
    %cst = arith.constant dense<0.000000e+00> : vector<128x32xf32>
    %9 = tpu.matmul %7, %8, %cst {dimension_numbers = #tpu.dot_dimension_numbers<[1], [0], [0], [1], [0, 0, 1, 1], [], []>} : vector<128x8xbf16>, vector<8x32xbf16>, vector<128x32xf32> -> vector<128x32xf32>
    %10 = arith.truncf %9 : vector<128x32xf32> to vector<128x32xbf16>
    %11 = vector.extract_strided_slice %10 {offsets = [0, 0], sizes = [128, 16], strides = [1, 1]} : vector<128x32xbf16> to vector<128x16xbf16>
    %c0_4 = arith.constant 0 : index
    %c0_5 = arith.constant 0 : index
    %c0_6 = arith.constant 0 : index
    %12 = vector.load %arg8[%c0_4, %c0_5, %c0_6] : memref<2x256x16xbf16, #tpu.memory_space<vmem>>, vector<1x256x16xbf16>
    %13 = vector.shape_cast %12 : vector<1x256x16xbf16> to vector<256x16xbf16>
    %c0_7 = arith.constant 0 : index
    %c0_8 = arith.constant 0 : index
    %c0_9 = arith.constant 0 : index
    %14 = vector.load %arg9[%c0_7, %c0_8, %c0_9] : memref<2x256x16xbf16, #tpu.memory_space<vmem>>, vector<1x256x16xbf16>
    %15 = vector.shape_cast %14 : vector<1x256x16xbf16> to vector<256x16xbf16>
    %cst_10 = arith.constant dense<0.000000e+00> : vector<128x256xf32>
    %16 = tpu.matmul %11, %13, %cst_10 {dimension_numbers = #tpu.dot_dimension_numbers<[1], [1], [0], [0], [0, 0, 1, 0], [], []>} : vector<128x16xbf16>, vector<256x16xbf16>, vector<128x256xf32> -> vector<128x256xf32>
    %cst_11 = arith.constant dense<0xFF800000> : vector<128xf32>
    %17 = vector.multi_reduction <maximumf>, %16, %cst_11 [1] : vector<128x256xf32> to vector<128xf32>
    %18 = vector.shape_cast %17 : vector<128xf32> to vector<128x1xf32>
    %19 = vector.broadcast %18 : vector<128x1xf32> to vector<128x256xf32>
    %20 = arith.subf %16, %19 : vector<128x256xf32>
    %21 = arith.truncf %20 : vector<128x256xf32> to vector<128x256xbf16>
    %22 = math.exp %21 : vector<128x256xbf16>
    %23 = arith.extf %22 : vector<128x256xbf16> to vector<128x256xf32>
    %cst_12 = arith.constant dense<0.000000e+00> : vector<128xf32>
    %24 = vector.multi_reduction <add>, %23, %cst_12 [1] : vector<128x256xf32> to vector<128xf32>
    %25 = vector.shape_cast %24 : vector<128xf32> to vector<128x1xf32>
    %cst_13 = arith.constant dense<0.000000e+00> : vector<128x16xf32>
    %26 = tpu.matmul %22, %15, %cst_13 {dimension_numbers = #tpu.dot_dimension_numbers<[1], [0], [0], [1], [0, 0, 1, 1], [], []>} : vector<128x256xbf16>, vector<256x16xbf16>, vector<128x16xf32> -> vector<128x16xf32>
    %27 = tpu.reciprocal %25 {approx = true} : vector<128x1xf32> -> vector<128x1xf32>
    %28 = vector.broadcast %27 : vector<128x1xf32> to vector<128x16xf32>
    %29 = arith.mulf %26, %28 : vector<128x16xf32>
    %c0_14 = arith.constant 0 : index
    %c0_15 = arith.constant 0 : index
    %c0_16 = arith.constant 0 : index
    %30 = vector.load %arg6[%c0_14, %c0_15, %c0_16] : memref<2x8x16xbf16, #tpu.memory_space<vmem>>, vector<1x8x16xbf16>
    %31 = vector.shape_cast %30 : vector<1x8x16xbf16> to vector<8x16xbf16>
    %32 = arith.truncf %29 : vector<128x16xf32> to vector<128x16xbf16>
    %cst_17 = arith.constant dense<0.000000e+00> : vector<8x128xf32>
    %33 = tpu.matmul %31, %32, %cst_17 {dimension_numbers = #tpu.dot_dimension_numbers<[1], [1], [0], [0], [0, 0, 1, 0], [], []>} : vector<8x16xbf16>, vector<128x16xbf16>, vector<8x128xf32> -> vector<8x128xf32>
    %34 = vector.extract_strided_slice %10 {offsets = [0, 16], sizes = [128, 16], strides = [1, 1]} : vector<128x32xbf16> to vector<128x16xbf16>
    %c1 = arith.constant 1 : index
    %c0_18 = arith.constant 0 : index
    %c0_19 = arith.constant 0 : index
    %35 = vector.load %arg8[%c1, %c0_18, %c0_19] : memref<2x256x16xbf16, #tpu.memory_space<vmem>>, vector<1x256x16xbf16>
    %36 = vector.shape_cast %35 : vector<1x256x16xbf16> to vector<256x16xbf16>
    %c1_20 = arith.constant 1 : index
    %c0_21 = arith.constant 0 : index
    %c0_22 = arith.constant 0 : index
    %37 = vector.load %arg9[%c1_20, %c0_21, %c0_22] : memref<2x256x16xbf16, #tpu.memory_space<vmem>>, vector<1x256x16xbf16>
    %38 = vector.shape_cast %37 : vector<1x256x16xbf16> to vector<256x16xbf16>
    %cst_23 = arith.constant dense<0.000000e+00> : vector<128x256xf32>
    %39 = tpu.matmul %34, %36, %cst_23 {dimension_numbers = #tpu.dot_dimension_numbers<[1], [1], [0], [0], [0, 0, 1, 0], [], []>} : vector<128x16xbf16>, vector<256x16xbf16>, vector<128x256xf32> -> vector<128x256xf32>
    %cst_24 = arith.constant dense<0xFF800000> : vector<128xf32>
    %40 = vector.multi_reduction <maximumf>, %39, %cst_24 [1] : vector<128x256xf32> to vector<128xf32>
    %41 = vector.shape_cast %40 : vector<128xf32> to vector<128x1xf32>
    %42 = vector.broadcast %41 : vector<128x1xf32> to vector<128x256xf32>
    %43 = arith.subf %39, %42 : vector<128x256xf32>
    %44 = arith.truncf %43 : vector<128x256xf32> to vector<128x256xbf16>
    %45 = math.exp %44 : vector<128x256xbf16>
    %46 = arith.extf %45 : vector<128x256xbf16> to vector<128x256xf32>
    %cst_25 = arith.constant dense<0.000000e+00> : vector<128xf32>
    %47 = vector.multi_reduction <add>, %46, %cst_25 [1] : vector<128x256xf32> to vector<128xf32>
    %48 = vector.shape_cast %47 : vector<128xf32> to vector<128x1xf32>
    %cst_26 = arith.constant dense<0.000000e+00> : vector<128x16xf32>
    %49 = tpu.matmul %45, %38, %cst_26 {dimension_numbers = #tpu.dot_dimension_numbers<[1], [0], [0], [1], [0, 0, 1, 1], [], []>} : vector<128x256xbf16>, vector<256x16xbf16>, vector<128x16xf32> -> vector<128x16xf32>
    %50 = tpu.reciprocal %48 {approx = true} : vector<128x1xf32> -> vector<128x1xf32>
    %51 = vector.broadcast %50 : vector<128x1xf32> to vector<128x16xf32>
    %52 = arith.mulf %49, %51 : vector<128x16xf32>
    %c1_27 = arith.constant 1 : index
    %c0_28 = arith.constant 0 : index
    %c0_29 = arith.constant 0 : index
    %53 = vector.load %arg6[%c1_27, %c0_28, %c0_29] : memref<2x8x16xbf16, #tpu.memory_space<vmem>>, vector<1x8x16xbf16>
    %54 = vector.shape_cast %53 : vector<1x8x16xbf16> to vector<8x16xbf16>
    %55 = arith.truncf %52 : vector<128x16xf32> to vector<128x16xbf16>
    %cst_30 = arith.constant dense<0.000000e+00> : vector<8x128xf32>
    %56 = tpu.matmul %54, %55, %cst_30 {dimension_numbers = #tpu.dot_dimension_numbers<[1], [1], [0], [0], [0, 0, 1, 0], [], []>} : vector<8x16xbf16>, vector<128x16xbf16>, vector<8x128xf32> -> vector<8x128xf32>
    %57 = arith.addf %33, %56 : vector<8x128xf32>
    %58 = arith.truncf %57 : vector<8x128xf32> to vector<8x128xbf16>
    %c0_31 = arith.constant 0 : index
    %c0_32 = arith.constant 0 : index
    %c0_33 = arith.constant 0 : index
    %59 = vector.load %arg7[%c0_31, %c0_32, %c0_33] : memref<1x8x128xbf16, #tpu.memory_space<vmem>>, vector<1x8x128xbf16>
    %60 = vector.shape_cast %59 : vector<1x8x128xbf16> to vector<8x128xbf16>
    %61 = vector.shape_cast %58 : vector<8x128xbf16> to vector<1x8x128xbf16>
    tpu.vector_store %arg7[%c0_31, %c0_32, %c0_33], %61 {strides = array<i32>} : memref<1x8x128xbf16, #tpu.memory_space<vmem>>, vector<1x8x128xbf16>,
    return
  }
  func.func @transform_0(%arg0: i32, %arg1: i32) -> (i32, i32, i32) {
    %c0_i32 = arith.constant 0 : i32
    %c0_i32_0 = arith.constant 0 : i32
    %c0_i32_1 = arith.constant 0 : i32
    return %arg0, %c0_i32, %c0_i32_0 : i32, i32, i32
  }
  func.func @transform_1(%arg0: i32, %arg1: i32) -> (i32, i32) {
    %c0_i32 = arith.constant 0 : i32
    %c0_i32_0 = arith.constant 0 : i32
    %c0_i32_1 = arith.constant 0 : i32
    return %c0_i32, %c0_i32_0 : i32, i32
  }
  func.func @transform_2(%arg0: i32, %arg1: i32) -> (i32, i32) {
    %c0_i32 = arith.constant 0 : i32
    %c0_i32_0 = arith.constant 0 : i32
    %c0_i32_1 = arith.constant 0 : i32
    return %c0_i32, %c0_i32_0 : i32, i32
  }
  func.func @transform_3(%arg0: i32, %arg1: i32) -> (i32, i32) {
    %c0_i32 = arith.constant 0 : i32
    %c0_i32_0 = arith.constant 0 : i32
    %c0_i32_1 = arith.constant 0 : i32
    return %c0_i32, %c0_i32_0 : i32, i32
  }
  func.func @transform_4(%arg0: i32, %arg1: i32) -> (i32, i32, i32) {
    %c0_i32 = arith.constant 0 : i32
    %c0_i32_0 = arith.constant 0 : i32
    %c0_i32_1 = arith.constant 0 : i32
    %c0_i32_2 = arith.constant 0 : i32
    return %c0_i32, %c0_i32_0, %c0_i32_1 : i32, i32, i32
  }
  func.func @transform_5(%arg0: i32, %arg1: i32) -> (i32, i32, i32) {
    %c0_i32 = arith.constant 0 : i32
    %c0_i32_0 = arith.constant 0 : i32
    return %arg0, %c0_i32, %arg1 : i32, i32, i32
  }
}

</mosaic_0001>

<bundles_post_ra>
// kernel: tpu_custom_call.1
= control target key start
LH: loop header
LB: loop body
LE: loop exit
PB: predicated region body
PF: predicated region fallthrough
CT: control target
= control target key end

     0   :  { %10 = vsyncpa [#allocation5], 0  ;;  %s4288_s0 = inlined_call_operand.vmem [shape: bf16[2,256,8], index: 0, kind: input, shape index: {}]   ;;  %s4289_s1 = inlined_call_operand.vmem [shape: bf16[8,32], index: 1, kind: input, shape index: {}]   ;;  %s4290_s2 = inlined_call_operand.vmem [shape: bf16[8,32], index: 2, kind: input, shape index: {}]   ;;  %s4291_s3 = inlined_call_operand.vmem [shape: bf16[8,32], index: 3, kind: input, shape index: {}]   ;;  %s4292_s4 = inlined_call_operand.vmem [shape: bf16[2,8,16], index: 4, kind: input, shape index: {}]   ;;  %s4293_s5 = inlined_call_operand.hbm [shape: bf16[2,8,256], index: 5, kind: output, shape index: {}]  }
   0x1   :  { %12 = vsyncpa [#allocation5 + $0x1], 0  ;;  %s3426_s18 = smov 0   ;;  %s3428_s19 = smov 0  }
   0x2   :  { %s3430_s20 = smov 0   ;;  %s3432_s21 = smov 0  }
   0x3   :  { %s3434_s22 = smov 0   ;;  %s3436_s23 = smov 0  }
   0x4   :  { %s3438_s24 = smov 0   ;;  %s3440_s25 = smov 0  }
   0x5 LB: > { %s2569_s26 = sadd.s32 4294967295, %s3389_s25   ;;  %s2570_s27 = sadd.s32 4294967294, %s3389_s25   ;;  %s3389_s25 = sphi %s3440_s25, %s18_s25   ;;  %s3385_s24 = sphi %s3438_s24, %s4331_s24   ;;  %s3381_s23 = sphi %s3436_s23, %s4330_s23   ;;  %s3377_s22 = sphi %s3434_s22, %s4329_s22   ;;  %s3373_s21 = sphi %s3432_s21, %s4328_s21   ;;  %s3369_s20 = sphi %s3430_s20, %s4327_s20   ;;  %s3365_s19 = sphi %s3428_s19, %s4326_s19   ;;  %s3361_s18 = sphi %s3426_s18, %s4325_s18  }
   0x6   : > { %s27_s28 = sadd.s32 1, %s3381_s23  ;;  %s30_s29 = sadd.s32 1, %s3385_s24 }
   0x7   : > { %p28_p0 = scmp.ge.s32.totalorder %s27_s28, 2  ;;  %p159_p1 = scmp.ne.s32.totalorder %s3369_s20, %s3365_s19 }
   0x8   : > { %p160_p2 = scmp.eq.s32.totalorder %s2569_s26, 3  ;;  %p165_p5 = scmp.ne.s32.totalorder %s3365_s19, %s3361_s18 }
   0x9   : > { %s4333_s28 = smov (%p28_p0, %s27_s28), 0  ;;  %s4335_s29 = smov (!%p28_p0, %s30_s29), %s3385_s24 }
   0xa   : > { %s145_s30 = ssub.s32 %s3381_s23, %s4333_s28  ;;  %p3477_p3 = por %p160_p2, %p159_p1 }
   0xb   : > { %p32_p4 = scmp.ge.s32.totalorder %s4335_s29, 2  ;;  %p166_p6 = scmp.eq.s32.totalorder %s2570_s27, 3 }
   0xc   : > { %p2573_p7 = scmp.ge.s32.totalorder %s3389_s25, 1  ;;  %p204_p9 = scmp.lt.s32.totalorder %s3389_s25, 5 }
   0xd   : > { %s4337_s29 = smov (%p32_p4, %s4335_s29), 0  ;;  %p3486_p8 = por %p166_p6, %p165_p5 }
   0xe   : > { %s144_s8 = ssub.s32 %s3385_s24, %s4337_s29  ;;  %s149_s9 = sadd.s32 1, %s3369_s20 }
   0xf   : > { %s146_s10 = sor.u32 %s145_s30, %s144_s8  ;;  %p205_p10 = pnand %p2573_p7, %p204_p9 }
  0x10   : > { %p147_p11 = scmp.eq.s32.totalorder %s146_s10, 0 }
  0x11   : > { %208 = sbr.rel (%p205_p10) target bundleno = 1993 (0x7c9), region = 40 }
  0x12   : > { %s3495_s11 = scalar_select %p147_p11, %s3369_s20, %s149_s9  }
  0x18   : > { %s229_s12 = sand.u32 1, %s3365_s19   ;;  %p232_p12 = scmp.lt.s32.totalorder %s3377_s22, 1 }
  0x19   : > { %s3501_s13 = sshll.u32 %s229_s12, 2  ;;  %p2577_p13 = scmp.ne.s32.totalorder %s3373_s21, 0 }
  0x1a   : > { %s233_s14 = scalar_select %p232_p12, %s3377_s22, 1 }
  0x1b   : > { %s231_s27 = scalar_lea.vmem [#allocation4], %s3501_s13  ;;  %241 = sbr.rel (%p2577_p13) target bundleno = 428 (0x1ac), region = 44  ;;  %v274_v0 = vld [vmem:[%s4290_s2] sm:$0xf] (!%p2577_p13)  ;;  %vm404_vm0 = vcmask (!%p2577_p13), 1043456   ;;  %vm355_vm1 = vcmask (!%p2577_p13), 64512  }
  0x1c   : > { %s2668_s15 = sshll.u32 %s233_s14, 7  ;;  %v569_v1 = vld [vmem:[%s4291_s3] sm:$0xf] (!%p2577_p13)  ;;  %3049 = vmatprep.subr.msk.bf16.mxu0 (!%p2577_p13), %vm404_vm0, %v274_v0  ;;  %v406_v3 = vsel (!%p2577_p13), %vm404_vm0, %v274_v0, 0  ;;  %vm750_vm2 = vcmask (!%p2577_p13), 130048   ;;  %s3391_s14 = smov (!%p2577_p13), 112  }
  0x1d   : > { %s3507_s26 = scalar_lea.vmem %s4288_s0, %s2668_s15  ;;  %3050 = vmatprep.subr.msk.bf16.mxu1 (!%p2577_p13), %vm404_vm0, %v569_v1  ;;  %v571_v4 = vsel (!%p2577_p13), %vm404_vm0, %v569_v1, 0  ;;  %2923 = vmatpush3.bf16.msra.mxu0 (!%p2577_p13), %v406_v3 }
  0x1e   : > { %v3143_v2 = vld [vmem:[%s3507_s26] sm:$0xff] (!%p2577_p13)   ;;  %2957 = vmatpush3.bf16.msra.mxu1 (!%p2577_p13), %v571_v4  ;;  %v3144_v5 = vld [vmem:[%s3507_s26 + $0x8] sm:$0xff] (!%p2577_p13)   ;;  %v3145_v6 = vld [vmem:[%s3507_s26 + $0x10] sm:$0xff] (!%p2577_p13)  }
  0x1f   : > { %2924 = vmatprep.mubr.msk.bf16.mxu0 (!%p2577_p13), %vm355_vm1, %v3143_v2  ;;  %2958 = vmatprep.mubr.msk.bf16.mxu1 (!%p2577_p13), %vm355_vm1, %v3143_v2  ;;  %v3146_v7 = vld [vmem:[%s3507_s26 + $0x18] sm:$0xff] (!%p2577_p13)   ;;  %v3147_v8 = vld [vmem:[%s3507_s26 + $0x20] sm:$0xff] (!%p2577_p13)   ;;  %v3148_v9 = vld [vmem:[%s3507_s26 + $0x28] sm:$0xff] (!%p2577_p13)  }
  0x20   : > { %2925 = vmatmul.mubr.msk.bf16.vlgmr.msra.gmra.mrb[0].mxu0 (!%p2577_p13), %vm355_vm1, %v3144_v5  ;;  %v3149_v10 = vld [vmem:[%s3507_s26 + $0x30] sm:$0xff] (!%p2577_p13)   ;;  %v3150_v11 = vld [vmem:[%s3507_s26 + $0x38] sm:$0xff] (!%p2577_p13)   ;;  %v3151_v12 = vld [vmem:[%s3507_s26 + $0x40] sm:$0xff] (!%p2577_p13)  }
  0x21   : > { %2959 = vmatmul.mubr.msk.bf16.vlgmr.msra.gmra.mrb[0].mxu1 (!%p2577_p13), %vm355_vm1, %v3144_v5  ;;  %2928 = vmatprep.mubr.msk.bf16.mxu0 (!%p2577_p13), %vm355_vm1, %v3145_v6  ;;  %v3152_v13 = vld [vmem:[%s3507_s26 + $0x48] sm:$0xff] (!%p2577_p13)   ;;  %v3153_v14 = vld [vmem:[%s3507_s26 + $0x50] sm:$0xff] (!%p2577_p13)   ;;  %v3154_v15 = vld [vmem:[%s3507_s26 + $0x58] sm:$0xff] (!%p2577_p13)  }
  0x22   : > { %2962 = vmatprep.mubr.msk.bf16.mxu1 %vm355_vm1, %v3145_v6  ;;  %v3155_v16 = vld [vmem:[%s3507_s26 + $0x60] sm:$0xff]   ;;  %v3156_v17 = vld [vmem:[%s3507_s26 + $0x68] sm:$0xff]   ;;  %v3157_v18 = vld [vmem:[%s3507_s26 + $0x70] sm:$0xff]  }
  0x23   : > { %v3158_v19 = vld [vmem:[%s3507_s26 + $0x78] sm:$0xff]  }
  0x28   : > { %2929 = vmatmul.mubr.msk.bf16.gmra.mrb[4].mxu0 %vm355_vm1, %v3146_v7 }
  0x29   : > { %2963 = vmatmul.mubr.msk.bf16.gmra.mrb[4].mxu1 %vm355_vm1, %v3146_v7  ;;  %2932 = vmatprep.mubr.msk.bf16.mxu0 %vm355_vm1, %v3147_v8 }
  0x2a   : > { %2966 = vmatprep.mubr.msk.bf16.mxu1 %vm355_vm1, %v3147_v8 }
  0x30   : > { %2933 = vmatmul.mubr.msk.bf16.gmra.mrb[8].mxu0 %vm355_vm1, %v3148_v9 }
  0x31   : > { %2967 = vmatmul.mubr.msk.bf16.gmra.mrb[8].mxu1 %vm355_vm1, %v3148_v9  ;;  %2936 = vmatprep.mubr.msk.bf16.mxu0 %vm355_vm1, %v3149_v10 }
  0x32   : > { %2970 = vmatprep.mubr.msk.bf16.mxu1 %vm355_vm1, %v3149_v10 }
  0x38   : > { %2937 = vmatmul.mubr.msk.bf16.gmra.mrb[12].mxu0 %vm355_vm1, %v3150_v11 }
  0x39   : > { %2971 = vmatmul.mubr.msk.bf16.gmra.mrb[12].mxu1 %vm355_vm1, %v3150_v11  ;;  %2940 = vmatprep.mubr.msk.bf16.mxu0 %vm355_vm1, %v3151_v12 }
  0x3a   : > { %2974 = vmatprep.mubr.msk.bf16.mxu1 %vm355_vm1, %v3151_v12 }
  0x40   : > { %2941 = vmatmul.mubr.msk.bf16.gmra.mrb[16].mxu0 %vm355_vm1, %v3152_v13 }
  0x41   : > { %2975 = vmatmul.mubr.msk.bf16.gmra.mrb[16].mxu1 %vm355_vm1, %v3152_v13  ;;  %2944 = vmatprep.mubr.msk.bf16.mxu0 %vm355_vm1, %v3153_v14 }
  0x42   : > { %2978 = vmatprep.mubr.msk.bf16.mxu1 %vm355_vm1, %v3153_v14 }
  0x48   : > { %2945 = vmatmul.mubr.msk.bf16.gmra.mrb[20].mxu0 %vm355_vm1, %v3154_v15 }
  0x49   : > { %2979 = vmatmul.mubr.msk.bf16.gmra.mrb[20].mxu1 %vm355_vm1, %v3154_v15  ;;  %2948 = vmatprep.mubr.msk.bf16.mxu0 %vm355_vm1, %v3155_v16 }
  0x4a   : > { %2982 = vmatprep.mubr.msk.bf16.mxu1 %vm355_vm1, %v3155_v16 }
  0x50   : > { %2949 = vmatmul.mubr.msk.bf16.gmra.mrb[24].mxu0 %vm355_vm1, %v3156_v17 }
  0x51   : > { %2983 = vmatmul.mubr.msk.bf16.gmra.mrb[24].mxu1 %vm355_vm1, %v3156_v17  ;;  %2952 = vmatprep.mubr.msk.bf16.mxu0 %vm355_vm1, %v3157_v18 }
  0x52   : > { %2986 = vmatprep.mubr.msk.bf16.mxu1 %vm355_vm1, %v3157_v18 }
  0x58   : > { %2953 = vmatmul.mubr.msk.bf16.gmra.mrb[28].mxu0 %vm355_vm1, %v3158_v19 }
  0x59   : > { %2987 = vmatmul.mubr.msk.bf16.gmra.mrb[28].mxu1 %vm355_vm1, %v3158_v19 }
  0xf3   : > { %v2926_v20 = vpop.f32.mrb[0].mxu0 }
  0xf4   : > { %v2960_v21 = vpop.f32.mrb[0].mxu1  ;;  %v442_v22 = vpop.f32.mrb[1].mxu0 }
  0xf5   : > { %v607_v23 = vpop.f32.mrb[1].mxu1  ;;  %v2927_v24 = vpop.f32.mrb[2].mxu0 }
  0xf6   : > { %v2961_v25 = vpop.f32.mrb[2].mxu1  ;;  %v735_v26 = vpack.c.bf16 %v2927_v24, %v2926_v20  ;;  %v445_v27 = vpop.f32.mrb[3].mxu0 }
  0xf7   : > { %v768_v28 = vpack.c.bf16 %v2961_v25, %v2960_v21  ;;  %v610_v29 = vpop.f32.mrb[3].mxu1  ;;  %v734_v30 = vpack.c.bf16 %v445_v27, %v442_v22 }
  0xf8   : > { %v767_v31 = vpack.c.bf16 %v610_v29, %v607_v23  ;;  %752 = vst.msk [vmem:[#allocation2 + $0x8] sm:$0xff] %vm750_vm2, %v735_v26  ;;  %817 = vrot.lane.b32.xlu0 %v735_v26, %s3391_s14 }
  0xf9   : > { %784 = vst.msk [vmem:[#allocation3 + $0x8] sm:$0xff] %vm750_vm2, %v768_v28  ;;  %898 = vrot.lane.b32.xlu1 %v768_v28, %s3391_s14  ;;  %751 = vst.msk [vmem:[#allocation2] sm:$0xff] %vm750_vm2, %v734_v30 }
  0xfa   : > { %783 = vst.msk [vmem:[#allocation3] sm:$0xff] %vm750_vm2, %v767_v31 }
  0xfb   : > { %v2930_v32 = vpop.f32.mrb[4].mxu0 }
  0xfc   : > { %v2964_v33 = vpop.f32.mrb[4].mxu1  ;;  %815 = vrot.lane.b32.xlu0 %v734_v30, %s3391_s14  ;;  %v458_v34 = vpop.f32.mrb[5].mxu0 }
  0xfd   : > { %v623_v35 = vpop.f32.mrb[5].mxu1  ;;  %v2931_v36 = vpop.f32.mrb[6].mxu0 }
  0xfe   : > { %v2965_v37 = vpop.f32.mrb[6].mxu1  ;;  %v737_v38 = vpack.c.bf16 %v2931_v36, %v2930_v32  ;;  %v461_v39 = vpop.f32.mrb[7].mxu0 }
  0xff   : > { %v770_v40 = vpack.c.bf16 %v2965_v37, %v2964_v33  ;;  %v626_v41 = vpop.f32.mrb[7].mxu1  ;;  %v736_v42 = vpack.c.bf16 %v461_v39, %v458_v34 }
 0x100   : > { %v769_v43 = vpack.c.bf16 %v626_v41, %v623_v35  ;;  %754 = vst.msk [vmem:[#allocation2 + $0x18] sm:$0xff] %vm750_vm2, %v737_v38  ;;  %896 = vrot.lane.b32.xlu0 %v767_v31, %s3391_s14  ;;  %821 = vrot.lane.b32.xlu1 %v737_v38, %s3391_s14 }
 0x101   : > { %786 = vst.msk [vmem:[#allocation3 + $0x18] sm:$0xff] %vm750_vm2, %v770_v40  ;;  %753 = vst.msk [vmem:[#allocation2 + $0x10] sm:$0xff] %vm750_vm2, %v736_v42 }
 0x102   : > { %785 = vst.msk [vmem:[#allocation3 + $0x10] sm:$0xff] %vm750_vm2, %v769_v43 }
 0x103   : > { %v2934_v44 = vpop.f32.mrb[8].mxu0 }
 0x104   : > { %v2968_v45 = vpop.f32.mrb[8].mxu1  ;;  %900 = vrot.lane.b32.xlu0 %v769_v43, %s3391_s14  ;;  %902 = vrot.lane.b32.xlu1 %v770_v40, %s3391_s14  ;;  %v474_v46 = vpop.f32.mrb[9].mxu0 }
 0x105   : > { %v639_v47 = vpop.f32.mrb[9].mxu1  ;;  %v2935_v48 = vpop.f32.mrb[10].mxu0 }
 0x106   : > { %v2969_v49 = vpop.f32.mrb[10].mxu1  ;;  %v739_v50 = vpack.c.bf16 %v2935_v48, %v2934_v44  ;;  %v477_v51 = vpop.f32.mrb[11].mxu0 }
 0x107   : > { %v772_v52 = vpack.c.bf16 %v2969_v49, %v2968_v45  ;;  %v642_v53 = vpop.f32.mrb[11].mxu1  ;;  %v738_v54 = vpack.c.bf16 %v477_v51, %v474_v46 }
 0x108   : > { %v771_v55 = vpack.c.bf16 %v642_v53, %v639_v47  ;;  %756 = vst.msk [vmem:[#allocation2 + $0x28] sm:$0xff] %vm750_vm2, %v739_v50  ;;  %819 = vrot.lane.b32.xlu1 %v736_v42, %s3391_s14 }
 0x109   : > { %788 = vst.msk [vmem:[#allocation3 + $0x28] sm:$0xff] %vm750_vm2, %v772_v52  ;;  %755 = vst.msk [vmem:[#allocation2 + $0x20] sm:$0xff] %vm750_vm2, %v738_v54  ;;  %823 = vrot.lane.b32.xlu0 %v738_v54, %s3391_s14 }
 0x10a   : > { %787 = vst.msk [vmem:[#allocation3 + $0x20] sm:$0xff] %vm750_vm2, %v771_v55 }
 0x10b   : > { %v2938_v56 = vpop.f32.mrb[12].mxu0 }
 0x10c   : > { %v2972_v57 = vpop.f32.mrb[12].mxu1  ;;  %825 = vrot.lane.b32.xlu1 %v739_v50, %s3391_s14  ;;  %v490_v58 = vpop.f32.mrb[13].mxu0 }
 0x10d   : > { %v655_v59 = vpop.f32.mrb[13].mxu1  ;;  %904 = vrot.lane.b32.xlu0 %v771_v55, %s3391_s14  ;;  %v2939_v60 = vpop.f32.mrb[14].mxu0 }
 0x10e   : > { %v2973_v61 = vpop.f32.mrb[14].mxu1  ;;  %v741_v62 = vpack.c.bf16 %v2939_v60, %v2938_v56  ;;  %v493_v63 = vpop.f32.mrb[15].mxu0 }
 0x10f   : > { %v774_v0 = vpack.c.bf16 %v2973_v61, %v2972_v57  ;;  %v658_v1 = vpop.f32.mrb[15].mxu1  ;;  %v740_v2 = vpack.c.bf16 %v493_v63, %v490_v58 }
 0x110   : > { %v773_v3 = vpack.c.bf16 %v658_v1, %v655_v59  ;;  %758 = vst.msk [vmem:[#allocation2 + $0x38] sm:$0xff] %vm750_vm2, %v741_v62  ;;  %906 = vrot.lane.b32.xlu1 %v772_v52, %s3391_s14 }
 0x111   : > { %790 = vst.msk [vmem:[#allocation3 + $0x38] sm:$0xff] %vm750_vm2, %v774_v0  ;;  %757 = vst.msk [vmem:[#allocation2 + $0x30] sm:$0xff] %vm750_vm2, %v740_v2  ;;  %827 = vrot.lane.b32.xlu0 %v740_v2, %s3391_s14 }
 0x112   : > { %789 = vst.msk [vmem:[#allocation3 + $0x30] sm:$0xff] %vm750_vm2, %v773_v3 }
 0x113   : > { %v2942_v4 = vpop.f32.mrb[16].mxu0 }
 0x114   : > { %v2976_v5 = vpop.f32.mrb[16].mxu1  ;;  %829 = vrot.lane.b32.xlu1 %v741_v62, %s3391_s14  ;;  %v506_v6 = vpop.f32.mrb[17].mxu0 }
 0x115   : > { %v671_v7 = vpop.f32.mrb[17].mxu1  ;;  %908 = vrot.lane.b32.xlu0 %v773_v3, %s3391_s14  ;;  %v2943_v8 = vpop.f32.mrb[18].mxu0 }
 0x116   : > { %v2977_v9 = vpop.f32.mrb[18].mxu1  ;;  %v743_v10 = vpack.c.bf16 %v2943_v8, %v2942_v4  ;;  %v509_v11 = vpop.f32.mrb[19].mxu0 }
 0x117   : > { %v776_v12 = vpack.c.bf16 %v2977_v9, %v2976_v5  ;;  %v674_v13 = vpop.f32.mrb[19].mxu1  ;;  %v742_v14 = vpack.c.bf16 %v509_v11, %v506_v6 }
 0x118   : > { %v775_v15 = vpack.c.bf16 %v674_v13, %v671_v7  ;;  %760 = vst.msk [vmem:[#allocation2 + $0x48] sm:$0xff] %vm750_vm2, %v743_v10  ;;  %910 = vrot.lane.b32.xlu1 %v774_v0, %s3391_s14 }
 0x119   : > { %792 = vst.msk [vmem:[#allocation3 + $0x48] sm:$0xff] %vm750_vm2, %v776_v12  ;;  %759 = vst.msk [vmem:[#allocation2 + $0x40] sm:$0xff] %vm750_vm2, %v742_v14  ;;  %831 = vrot.lane.b32.xlu0 %v742_v14, %s3391_s14 }
 0x11a   : > { %791 = vst.msk [vmem:[#allocation3 + $0x40] sm:$0xff] %vm750_vm2, %v775_v15 }
 0x11b   : > { %v2946_v16 = vpop.f32.mrb[20].mxu0 }
 0x11c   : > { %v2980_v17 = vpop.f32.mrb[20].mxu1  ;;  %833 = vrot.lane.b32.xlu1 %v743_v10, %s3391_s14  ;;  %v522_v18 = vpop.f32.mrb[21].mxu0 }
 0x11d   : > { %v687_v19 = vpop.f32.mrb[21].mxu1  ;;  %912 = vrot.lane.b32.xlu0 %v775_v15, %s3391_s14  ;;  %v2947_v20 = vpop.f32.mrb[22].mxu0 }
 0x11e   : > { %v2981_v21 = vpop.f32.mrb[22].mxu1  ;;  %v745_v22 = vpack.c.bf16 %v2947_v20, %v2946_v16  ;;  %v525_v23 = vpop.f32.mrb[23].mxu0 }
 0x11f   : > { %v778_v24 = vpack.c.bf16 %v2981_v21, %v2980_v17  ;;  %v690_v25 = vpop.f32.mrb[23].mxu1  ;;  %v744_v26 = vpack.c.bf16 %v525_v23, %v522_v18 }
 0x120   : > { %v777_v27 = vpack.c.bf16 %v690_v25, %v687_v19  ;;  %762 = vst.msk [vmem:[#allocation2 + $0x58] sm:$0xff] %vm750_vm2, %v745_v22  ;;  %914 = vrot.lane.b32.xlu1 %v776_v12, %s3391_s14 }
 0x121   : > { %794 = vst.msk [vmem:[#allocation3 + $0x58] sm:$0xff] %vm750_vm2, %v778_v24  ;;  %761 = vst.msk [vmem:[#allocation2 + $0x50] sm:$0xff] %vm750_vm2, %v744_v26  ;;  %835 = vrot.lane.b32.xlu0 %v744_v26, %s3391_s14 }
 0x122   : > { %793 = vst.msk [vmem:[#allocation3 + $0x50] sm:$0xff] %vm750_vm2, %v777_v27 }
 0x123   : > { %v2950_v28 = vpop.f32.mrb[24].mxu0 }
 0x124   : > { %v2984_v29 = vpop.f32.mrb[24].mxu1  ;;  %837 = vrot.lane.b32.xlu1 %v745_v22, %s3391_s14  ;;  %v538_v30 = vpop.f32.mrb[25].mxu0 }
 0x125   : > { %v703_v31 = vpop.f32.mrb[25].mxu1  ;;  %916 = vrot.lane.b32.xlu0 %v777_v27, %s3391_s14  ;;  %v2951_v32 = vpop.f32.mrb[26].mxu0 }
 0x126   : > { %v2985_v33 = vpop.f32.mrb[26].mxu1  ;;  %v747_v34 = vpack.c.bf16 %v2951_v32, %v2950_v28  ;;  %v541_v35 = vpop.f32.mrb[27].mxu0 }
 0x127   : > { %v780_v36 = vpack.c.bf16 %v2985_v33, %v2984_v29  ;;  %v706_v37 = vpop.f32.mrb[27].mxu1  ;;  %v746_v38 = vpack.c.bf16 %v541_v35, %v538_v30 }
 0x128   : > { %v779_v39 = vpack.c.bf16 %v706_v37, %v703_v31  ;;  %764 = vst.msk [vmem:[#allocation2 + $0x68] sm:$0xff] %vm750_vm2, %v747_v34  ;;  %918 = vrot.lane.b32.xlu1 %v778_v24, %s3391_s14 }
 0x129   : > { %796 = vst.msk [vmem:[#allocation3 + $0x68] sm:$0xff] %vm750_vm2, %v780_v36  ;;  %763 = vst.msk [vmem:[#allocation2 + $0x60] sm:$0xff] %vm750_vm2, %v746_v38  ;;  %839 = vrot.lane.b32.xlu0 %v746_v38, %s3391_s14 }
 0x12a   : > { %795 = vst.msk [vmem:[#allocation3 + $0x60] sm:$0xff] %vm750_vm2, %v779_v39 }
 0x12b   : > { %v2954_v40 = vpop.f32.mrb[28].mxu0 }
 0x12c   : > { %v2988_v41 = vpop.f32.mrb[28].mxu1  ;;  %841 = vrot.lane.b32.xlu1 %v747_v34, %s3391_s14  ;;  %v554_v42 = vpop.f32.mrb[29].mxu0 }
 0x12d   : > { %v719_v43 = vpop.f32.mrb[29].mxu1  ;;  %920 = vrot.lane.b32.xlu0 %v779_v39, %s3391_s14  ;;  %v2955_v44 = vpop.f32.mrb[30].mxu0 }
 0x12e   : > { %v2989_v45 = vpop.f32.mrb[30].mxu1  ;;  %v749_v46 = vpack.c.bf16 %v2955_v44, %v2954_v40  ;;  %v557_v47 = vpop.f32.mrb[31].mxu0 }
 0x12f   : > { %v782_v48 = vpack.c.bf16 %v2989_v45, %v2988_v41  ;;  %v722_v49 = vpop.f32.mrb[31].mxu1  ;;  %v748_v50 = vpack.c.bf16 %v557_v47, %v554_v42 }
 0x130   : > { %v781_v51 = vpack.c.bf16 %v722_v49, %v719_v43  ;;  %766 = vst.msk [vmem:[#allocation2 + $0x78] sm:$0xff] %vm750_vm2, %v749_v46  ;;  %922 = vrot.lane.b32.xlu1 %v780_v36, %s3391_s14 }
 0x131   : > { %798 = vst.msk [vmem:[#allocation3 + $0x78] sm:$0xff] %vm750_vm2, %v782_v48  ;;  %765 = vst.msk [vmem:[#allocation2 + $0x70] sm:$0xff] %vm750_vm2, %v748_v50  ;;  %843 = vrot.lane.b32.xlu0 %v748_v50, %s3391_s14 }
 0x132   : > { %797 = vst.msk [vmem:[#allocation3 + $0x70] sm:$0xff] %vm750_vm2, %v781_v51 }
 0x134   : > { %845 = vrot.lane.b32.xlu1 %v749_v46, %s3391_s14 }
 0x135   : > { %924 = vrot.lane.b32.xlu0 %v781_v51, %s3391_s14 }
 0x138   : > { %926 = vrot.lane.b32.xlu1 %v782_v48, %s3391_s14 }
 0x16a   : > { %v818_v52 = vpop.permute.xlu0 %817 }
 0x16b   : > { %v899_v53 = vpop.permute.xlu1 %898  ;;  %865 = vst.msk [vmem:[#allocation2 + $0x88] sm:$0xff] %vm750_vm2, %v818_v52 }
 0x16c   : > { %946 = vst.msk [vmem:[#allocation3 + $0x88] sm:$0xff] %vm750_vm2, %v899_v53 }
 0x16e   : > { %v816_v54 = vpop.permute.xlu0 %815 }
 0x16f   : > { %864 = vst.msk [vmem:[#allocation2 + $0x80] sm:$0xff] %vm750_vm2, %v816_v54 }
 0x172   : > { %v897_v55 = vpop.permute.xlu0 %896  ;;  %v822_v56 = vpop.permute.xlu1 %821 }
 0x173   : > { %945 = vst.msk [vmem:[#allocation3 + $0x80] sm:$0xff] %vm750_vm2, %v897_v55  ;;  %867 = vst.msk [vmem:[#allocation2 + $0x98] sm:$0xff] %vm750_vm2, %v822_v56 }
 0x176   : > { %v901_v57 = vpop.permute.xlu0 %900  ;;  %v903_v58 = vpop.permute.xlu1 %902 }
 0x177   : > { %947 = vst.msk [vmem:[#allocation3 + $0x90] sm:$0xff] %vm750_vm2, %v901_v57  ;;  %948 = vst.msk [vmem:[#allocation3 + $0x98] sm:$0xff] %vm750_vm2, %v903_v58 }
 0x17a   : > { %v820_v59 = vpop.permute.xlu1 %819 }
 0x17b   : > { %866 = vst.msk [vmem:[#allocation2 + $0x90] sm:$0xff] %vm750_vm2, %v820_v59  ;;  %v824_v60 = vpop.permute.xlu0 %823 }
 0x17c   : > { %868 = vst.msk [vmem:[#allocation2 + $0xa0] sm:$0xff] %vm750_vm2, %v824_v60 }
 0x17e   : > { %v826_v61 = vpop.permute.xlu1 %825 }
 0x17f   : > { %869 = vst.msk [vmem:[#allocation2 + $0xa8] sm:$0xff] %vm750_vm2, %v826_v61  ;;  %v905_v62 = vpop.permute.xlu0 %904 }
 0x180   : > { %949 = vst.msk [vmem:[#allocation3 + $0xa0] sm:$0xff] %vm750_vm2, %v905_v62 }
 0x182   : > { %v907_v63 = vpop.permute.xlu1 %906 }
 0x183   : > { %950 = vst.msk [vmem:[#allocation3 + $0xa8] sm:$0xff] %vm750_vm2, %v907_v63  ;;  %v828_v0 = vpop.permute.xlu0 %827 }
 0x184   : > { %870 = vst.msk [vmem:[#allocation2 + $0xb0] sm:$0xff] %vm750_vm2, %v828_v0 }
 0x186   : > { %v830_v1 = vpop.permute.xlu1 %829 }
 0x187   : > { %871 = vst.msk [vmem:[#allocation2 + $0xb8] sm:$0xff] %vm750_vm2, %v830_v1  ;;  %v909_v2 = vpop.permute.xlu0 %908 }
 0x188   : > { %951 = vst.msk [vmem:[#allocation3 + $0xb0] sm:$0xff] %vm750_vm2, %v909_v2 }
 0x18a   : > { %v911_v3 = vpop.permute.xlu1 %910 }
 0x18b   : > { %952 = vst.msk [vmem:[#allocation3 + $0xb8] sm:$0xff] %vm750_vm2, %v911_v3  ;;  %v832_v4 = vpop.permute.xlu0 %831 }
 0x18c   : > { %872 = vst.msk [vmem:[#allocation2 + $0xc0] sm:$0xff] %vm750_vm2, %v832_v4 }
 0x18e   : > { %v834_v5 = vpop.permute.xlu1 %833 }
 0x18f   : > { %873 = vst.msk [vmem:[#allocation2 + $0xc8] sm:$0xff] %vm750_vm2, %v834_v5  ;;  %v913_v6 = vpop.permute.xlu0 %912 }
 0x190   : > { %953 = vst.msk [vmem:[#allocation3 + $0xc0] sm:$0xff] %vm750_vm2, %v913_v6 }
 0x192   : > { %v915_v7 = vpop.permute.xlu1 %914 }
 0x193   : > { %954 = vst.msk [vmem:[#allocation3 + $0xc8] sm:$0xff] %vm750_vm2, %v915_v7  ;;  %v836_v8 = vpop.permute.xlu0 %835 }
 0x194   : > { %874 = vst.msk [vmem:[#allocation2 + $0xd0] sm:$0xff] %vm750_vm2, %v836_v8 }
 0x196   : > { %v838_v9 = vpop.permute.xlu1 %837 }
 0x197   : > { %875 = vst.msk [vmem:[#allocation2 + $0xd8] sm:$0xff] %vm750_vm2, %v838_v9  ;;  %v917_v10 = vpop.permute.xlu0 %916 }
 0x198   : > { %955 = vst.msk [vmem:[#allocation3 + $0xd0] sm:$0xff] %vm750_vm2, %v917_v10 }
 0x19a   : > { %v919_v11 = vpop.permute.xlu1 %918 }
 0x19b   : > { %956 = vst.msk [vmem:[#allocation3 + $0xd8] sm:$0xff] %vm750_vm2, %v919_v11  ;;  %v840_v12 = vpop.permute.xlu0 %839 }
 0x19c   : > { %876 = vst.msk [vmem:[#allocation2 + $0xe0] sm:$0xff] %vm750_vm2, %v840_v12 }
 0x19e   : > { %v842_v13 = vpop.permute.xlu1 %841 }
 0x19f   : > { %877 = vst.msk [vmem:[#allocation2 + $0xe8] sm:$0xff] %vm750_vm2, %v842_v13  ;;  %v921_v14 = vpop.permute.xlu0 %920 }
 0x1a0   : > { %957 = vst.msk [vmem:[#allocation3 + $0xe0] sm:$0xff] %vm750_vm2, %v921_v14 }
 0x1a2   : > { %v923_v15 = vpop.permute.xlu1 %922 }
 0x1a3   : > { %958 = vst.msk [vmem:[#allocation3 + $0xe8] sm:$0xff] %vm750_vm2, %v923_v15  ;;  %v844_v16 = vpop.permute.xlu0 %843 }
 0x1a4   : > { %878 = vst.msk [vmem:[#allocation2 + $0xf0] sm:$0xff] %vm750_vm2, %v844_v16 }
 0x1a6   : > { %v846_v17 = vpop.permute.xlu1 %845 }
 0x1a7   : > { %879 = vst.msk [vmem:[#allocation2 + $0xf8] sm:$0xff] %vm750_vm2, %v846_v17  ;;  %v925_v18 = vpop.permute.xlu0 %924 }
 0x1a8   : > { %959 = vst.msk [vmem:[#allocation3 + $0xf0] sm:$0xff] %vm750_vm2, %v925_v18 }
 0x1aa   : > { %v927_v19 = vpop.permute.xlu1 %926 }
 0x1ab   : > { %960 = vst.msk [vmem:[#allocation3 + $0xf8] sm:$0xff] %vm750_vm2, %v927_v19 }
 0x1ac PF: > { %v982_v20 = vld [vmem:[%s4289_s1] sm:$0xf]  ;;  %vm1048_vm3 = vcmask 1043456   ;;  %s2626_s17 = sshll.u32 %s3373_s21, 7  ;;  %vm1189_vm4 = vcmask 130048   ;;  %v1166_v24 = vld [vmem:[#allocation2 + $0x48] sm:$0xff] }
 0x1ad   : > { %v1165_v21 = vld [vmem:[#allocation2 + $0x40] sm:$0xff]  ;;  %3051 = vmatprep.subr.msk.bf16.mxu0 %vm1048_vm3, %v982_v20  ;;  %v1050_v22 = vsel %vm1048_vm3, %v982_v20, 0  ;;  %s962_s30 = sshra.s32 %s2626_s17, 3  ;;  %vm1023_vm5 = vcmask 64512   ;;  %v1158_v26 = vld [vmem:[#allocation2 + $0x8] sm:$0xff]  ;;  %v1167_v31 = vld [vmem:[#allocation2 + $0x50] sm:$0xff] }
 0x1ae   : > { %v1157_v23 = vld [vmem:[#allocation2] sm:$0xff]  ;;  %2991 = vmatpush3.bf16.msra.mxu0 %v1050_v22  ;;  %s2627_s8 = sshll.u32 %s962_s30, 2  ;;  %3052 = vmatprep.subr.msk.bf16.mxu1 %vm1189_vm4, %v1165_v21  ;;  %v1218_v30 = vsel %vm1189_vm4, %v1158_v26, 0  ;;  %v1159_v34 = vld [vmem:[#allocation2 + $0x10] sm:$0xff]  ;;  %v1168_v36 = vld [vmem:[#allocation2 + $0x58] sm:$0xff]  ;;  %vm3394_vm6 = vmmov 0  }
 0x1af   : > { %v1215_v25 = vsel %vm1189_vm4, %v1157_v23, 0  ;;  %s3668_s9 = scalar_lea.vmem %s3507_s26, %s2627_s8  ;;  %v1221_v35 = vsel %vm1189_vm4, %v1159_v34, 0  ;;  %v1160_v39 = vld [vmem:[#allocation2 + $0x18] sm:$0xff]  ;;  %v1169_v41 = vld [vmem:[#allocation2 + $0x60] sm:$0xff]  ;;  %v1170_v45 = vld [vmem:[#allocation2 + $0x68] sm:$0xff]  ;;  %s3392_s26 = smov 112  }
 0x1b0   : > { %2713 = vmatpush3.bf16.xpose.msra.mxu1 %v1215_v25  ;;  %v3159_v27 = vld [vmem:[%s3668_s9] sm:$0xff]   ;;  %v3160_v28 = vld [vmem:[%s3668_s9 + $0x8] sm:$0xff]   ;;  %v3161_v29 = vld [vmem:[%s3668_s9 + $0x10] sm:$0xff]   ;;  %v1224_v40 = vsel %vm1189_vm4, %v1160_v39, 0  ;;  %s2664_s17 = sshll.u32 %s3377_s22, 1  ;;  %s3395_s15 = smov [#allocation4]  }
 0x1b1   : > { %3053 = vmatprep.subr.msk.bf16.mxu1 %vm1189_vm4, %v1166_v24  ;;  %2992 = vmatprep.mubr.msk.bf16.mxu0 %vm1023_vm5, %v3159_v27  ;;  %v3162_v32 = vld [vmem:[%s3668_s9 + $0x18] sm:$0xff]   ;;  %v3163_v33 = vld [vmem:[%s3668_s9 + $0x20] sm:$0xff]   ;;  %v3164_v37 = vld [vmem:[%s3668_s9 + $0x28] sm:$0xff]   ;;  %s2491_s30 = sadd.s32 %s3373_s21, %s2664_s17  ;;  %s2480_s21 = scalar_lea.sflag [#allocation5], %s229_s12 }
 0x1b2   : > { %2993 = vmatmul.mubr.msk.bf16.vlgmr.msra.gmra.mrb[0].mxu0 %vm1023_vm5, %v3160_v28  ;;  %v3165_v38 = vld [vmem:[%s3668_s9 + $0x30] sm:$0xff]   ;;  %v3166_v42 = vld [vmem:[%s3668_s9 + $0x38] sm:$0xff]   ;;  %v1161_v43 = vld [vmem:[#allocation2 + $0x20] sm:$0xff]  ;;  %s2665_s8 = sshll.u32 %s2491_s30, 6  ;;  %s2495_s9 = sshll.u32 %s231_s27, 4  ;;  %s4233_s9 = int_to_ptr.vmem [resolvable:$true] %s2495_s9 }
 0x1b3   : > { %2996 = vmatprep.mubr.msk.bf16.mxu0 %vm1023_vm5, %v3161_v29  ;;  %v1227_v44 = vsel %vm1189_vm4, %v1161_v43, 0  ;;  %v1162_v46 = vld [vmem:[#allocation2 + $0x28] sm:$0xff]  ;;  %v1171_v48 = vld [vmem:[#allocation2 + $0x70] sm:$0xff]  ;;  %v1172_v51 = vld [vmem:[#allocation2 + $0x78] sm:$0xff]  ;;  %s4231_s14 = scalar_lea.hbm %s4293_s5, %s2665_s8  ;;  %s3295_s22 = scalar_lea.vmem %s4233_s9, 64 }
 0x1b4   : > { %v1230_v47 = vsel %vm1189_vm4, %v1162_v46, 0  ;;  %v1163_v49 = vld [vmem:[#allocation2 + $0x30] sm:$0xff]  ;;  %v1164_v52 = vld [vmem:[#allocation2 + $0x38] sm:$0xff]  ;;  %v1181_v14 = vld [vmem:[#allocation3 + $0x40] sm:$0xff]  ;;  %p3296_p0 = scmp.ne.s32.totalorder %s4233_s9, %s3295_s22  ;;  %s3299_s16 = sshll.u32 %s3395_s15, 4  ;;  %s3300_s16 = int_to_ptr.vmem [resolvable:$false] %s3299_s16 }
 0x1b5   : > { %v1233_v50 = vsel %vm1189_vm4, %v1163_v49, 0  ;;  %v1236_v53 = vsel %vm1189_vm4, %v1164_v52, 0  ;;  %v1173_v15 = vld [vmem:[#allocation3] sm:$0xff]  ;;  %v1182_v16 = vld [vmem:[#allocation3 + $0x48] sm:$0xff]  ;;  %2744 = vmatprep.subr.bf16.mxu0 %v1181_v14  ;;  %v1183_v18 = vld [vmem:[#allocation3 + $0x50] sm:$0xff]  ;;  %s3301_s17 = scalar_lea.vmem %s3300_s16, 128  ;;  %p3302_p4 = scmp.lt.s32.totalorder %s4233_s9, %s3300_s16 }
 0x1b6   : > { %2745 = vmatpush3.bf16.msra.mxu0 %v1173_v15  ;;  %v1174_v17 = vld [vmem:[#allocation3 + $0x8] sm:$0xff]  ;;  %v1175_v19 = vld [vmem:[#allocation3 + $0x10] sm:$0xff]  ;;  %v1184_v20 = vld [vmem:[#allocation3 + $0x58] sm:$0xff]  ;;  %p3297_p1 = pnand %p3296_p0, %p3477_p3  ;;  %p3303_p5 = scmp.lt.s32.totalorder %s3301_s17, %s3295_s22 }
 0x1b7   : > { %2746 = vmatprep.subr.bf16.mxu0 %v1182_v16  ;;  %v1176_v21 = vld [vmem:[#allocation3 + $0x18] sm:$0xff]  ;;  %v1177_v39 = vld [vmem:[#allocation3 + $0x20] sm:$0xff]  ;;  %v1186_v43 = vld [vmem:[#allocation3 + $0x68] sm:$0xff] }
 0x1b8   : > { %2715 = vmatpush3.bf16.xpose.msra.mxu1 %v1218_v30  ;;  %p3298_p2 = pneg %p3297_p1  ;;  %p3304_p6 = por %p3303_p5, %p3302_p4 }
 0x1b9   : > { %3054 = vmatprep.subr.msk.bf16.mxu1 %vm1189_vm4, %v1167_v31 }
 0x1ba   : > { %2997 = vmatmul.mubr.msk.bf16.gmra.mrb[4].mxu0 %vm1023_vm5, %v3162_v32  ;;  %p3305_p7 = pnand %p3304_p6, %p3298_p2 }
 0x1bb   : > { %3000 = vmatprep.mubr.msk.bf16.mxu0 %vm1023_vm5, %v3163_v33  ;;  %2747 = vmatpush3.bf16.msra.mxu0 %v1174_v17 }
 0x1bc   : > { %2748 = vmatprep.subr.bf16.mxu0 %v1183_v18 }
 0x1bf   : > { %2749 = vmatpush3.bf16.msra.mxu0 %v1175_v19 }
 0x1c0   : > { %2717 = vmatpush3.bf16.xpose.msra.mxu1 %v1221_v35  ;;  %2750 = vmatprep.subr.bf16.mxu0 %v1184_v20 }
 0x1c1   : > { %3055 = vmatprep.subr.msk.bf16.mxu1 %vm1189_vm4, %v1168_v36 }
 0x1c2   : > { %3001 = vmatmul.mubr.msk.bf16.gmra.mrb[8].mxu0 %vm1023_vm5, %v3164_v37 }
 0x1c3   : > { %3004 = vmatprep.mubr.msk.bf16.mxu0 %vm1023_vm5, %v3165_v38  ;;  %2751 = vmatpush3.bf16.msra.mxu0 %v1176_v21  ;;  %v1185_v38 = vld [vmem:[#allocation3 + $0x60] sm:$0xff] }
 0x1c4   : > { %2752 = vmatprep.subr.bf16.mxu0 %v1185_v38 }
 0x1c7   : > { %2753 = vmatpush3.bf16.msra.mxu0 %v1177_v39 }
 0x1c8   : > { %2719 = vmatpush3.bf16.xpose.msra.mxu1 %v1224_v40  ;;  %2754 = vmatprep.subr.bf16.mxu0 %v1186_v43 }
 0x1c9   : > { %3056 = vmatprep.subr.msk.bf16.mxu1 %vm1189_vm4, %v1169_v41 }
 0x1ca   : > { %3005 = vmatmul.mubr.msk.bf16.gmra.mrb[12].mxu0 %vm1023_vm5, %v3166_v42 }
 0x1d0   : > { %2721 = vmatpush3.bf16.xpose.msra.mxu1 %v1227_v44 }
 0x1d1   : > { %3057 = vmatprep.subr.msk.bf16.mxu1 %vm1189_vm4, %v1170_v45  ;;  %v1178_v45 = vld [vmem:[#allocation3 + $0x28] sm:$0xff] }
 0x1d2   : > { %2755 = vmatpush3.bf16.msra.mxu0 %v1178_v45 }
 0x1d8   : > { %2723 = vmatpush3.bf16.xpose.msra.mxu1 %v1230_v47 }
 0x1d9   : > { %3058 = vmatprep.subr.msk.bf16.mxu1 %vm1189_vm4, %v1171_v48 }
 0x1e0   : > { %2725 = vmatpush3.bf16.xpose.msra.mxu1 %v1233_v50  ;;  %v1187_v50 = vld [vmem:[#allocation3 + $0x70] sm:$0xff] }
 0x1e1   : > { %3059 = vmatprep.subr.msk.bf16.mxu1 %vm1189_vm4, %v1172_v51  ;;  %2756 = vmatprep.subr.bf16.mxu0 %v1187_v50  ;;  %v1179_v51 = vld [vmem:[#allocation3 + $0x30] sm:$0xff] }
 0x1e2   : > { %2757 = vmatpush3.bf16.msra.mxu0 %v1179_v51 }
 0x1e8   : > { %2727 = vmatpush3.bf16.xpose.msra.mxu1 %v1236_v53  ;;  %v1188_v53 = vld [vmem:[#allocation3 + $0x78] sm:$0xff] }
 0x1e9   : > { %2758 = vmatprep.subr.bf16.mxu0 %v1188_v53 }
 0x285   : > { %v2994_v54 = vpop.f32.mrb[0].mxu0 }
 0x286   : > { %v1086_v55 = vpop.f32.mrb[1].mxu0 }
 0x287   : > { %v2995_v56 = vpop.f32.mrb[2].mxu0 }
 0x288   : > { %v3700_v57 = vpack.c.bf16 %v2995_v56, %v2994_v54  ;;  %v1089_v58 = vpop.f32.mrb[3].mxu0 }
 0x289   : > { %v3702_v59 = vpack.c.bf16 %v1089_v58, %v1086_v55  ;;  %v1180_v55 = vld [vmem:[#allocation3 + $0x38] sm:$0xff] }
 0x28a   : > { %2759 = vmatpush3.bf16.msra.mxu0 %v1180_v55 }
 0x28b   : > { %2728 = vmatprep.mubr.msk.bf16.mxu1 %vm1189_vm4, %v3702_v59 }
 0x28c   : > { %2729 = vmatmul.mubr.msk.bf16.vlgmr.msra.gmra.mrb[0].mxu1 %vm1189_vm4, %v3702_v59 }
 0x28d   : > { %2730 = vmatprep.mubr.msk.bf16.mxu1 %vm1189_vm4, %v3700_v57  ;;  %v2998_v60 = vpop.f32.mrb[4].mxu0 }
 0x28e   : > { %v1102_v61 = vpop.f32.mrb[5].mxu0 }
 0x28f   : > { %v2999_v62 = vpop.f32.mrb[6].mxu0 }
 0x290   : > { %v3710_v63 = vpack.c.bf16 %v2999_v62, %v2998_v60  ;;  %v1105_v0 = vpop.f32.mrb[7].mxu0 }
 0x291   : > { %v3712_v1 = vpack.c.bf16 %v1105_v0, %v1102_v61 }
 0x294   : > { %2731 = vmatmul.mubr.msk.bf16.gmra.mrb[4].mxu1 %vm1189_vm4, %v3700_v57 }
 0x295   : > { %2732 = vmatprep.mubr.msk.bf16.mxu1 %vm1189_vm4, %v3712_v1  ;;  %v3002_v2 = vpop.f32.mrb[8].mxu0 }
 0x296   : > { %v1118_v3 = vpop.f32.mrb[9].mxu0 }
 0x297   : > { %v3003_v4 = vpop.f32.mrb[10].mxu0 }
 0x298   : > { %v3718_v5 = vpack.c.bf16 %v3003_v4, %v3002_v2  ;;  %v1121_v6 = vpop.f32.mrb[11].mxu0  ;;  %v1746_v2 = vld [vmem:[#allocation2 + $0xc0] sm:$0xff] }
 0x299   : > { %v3720_v7 = vpack.c.bf16 %v1121_v6, %v1118_v3  ;;  %3060 = vmatprep.subr.msk.bf16.mxu0 %vm1189_vm4, %v1746_v2 }
 0x29c   : > { %2733 = vmatmul.mubr.msk.bf16.gmra.mrb[8].mxu1 %vm1189_vm4, %v3712_v1 }
 0x29d   : > { %2734 = vmatprep.mubr.msk.bf16.mxu1 %vm1189_vm4, %v3710_v63  ;;  %v3006_v8 = vpop.f32.mrb[12].mxu0 }
 0x29e   : > { %v1134_v9 = vpop.f32.mrb[13].mxu0 }
 0x29f   : > { %v3007_v10 = vpop.f32.mrb[14].mxu0 }
 0x2a0   : > { %v3726_v11 = vpack.c.bf16 %v3007_v10, %v3006_v8  ;;  %v1137_v12 = vpop.f32.mrb[15].mxu0 }
 0x2a1   : > { %v3728_v13 = vpack.c.bf16 %v1137_v12, %v1134_v9 }
 0x2a4   : > { %2735 = vmatmul.mubr.msk.bf16.gmra.mrb[12].mxu1 %vm1189_vm4, %v3710_v63 }
 0x2a5   : > { %2736 = vmatprep.mubr.msk.bf16.mxu1 %vm1189_vm4, %v3720_v7 }
 0x2ac   : > { %2737 = vmatmul.mubr.msk.bf16.gmra.mrb[16].mxu1 %vm1189_vm4, %v3720_v7 }
 0x2ad   : > { %2738 = vmatprep.mubr.msk.bf16.mxu1 %vm1189_vm4, %v3718_v5 }
 0x2b4   : > { %2739 = vmatmul.mubr.msk.bf16.gmra.mrb[20].mxu1 %vm1189_vm4, %v3718_v5 }
 0x2b5   : > { %2740 = vmatprep.mubr.msk.bf16.mxu1 %vm1189_vm4, %v3728_v13 }
 0x2bc   : > { %2741 = vmatmul.mubr.msk.bf16.gmra.mrb[24].mxu1 %vm1189_vm4, %v3728_v13 }
 0x2bd   : > { %2742 = vmatprep.mubr.msk.bf16.mxu1 %vm1189_vm4, %v3726_v11 }
 0x2c4   : > { %2743 = vmatmul.mubr.msk.bf16.gmra.mrb[28].mxu1 %vm1189_vm4, %v3726_v11 }
 0x35f   : > { %v3748_v22 = vpop.f32.mrb[0].mxu1 }
 0x360   : > { %v3750_v23 = vpop.f32.mrb[1].mxu1 }
 0x361   : > { %v3752_v24 = vpop.f32.mrb[2].mxu1  ;;  %v1375_v25 = vmax.f32 %v3748_v22, %v3750_v23 }
 0x362   : > { %v3756_v26 = vpop.f32.mrb[3].mxu1 }
 0x363   : > { %1376 = vmax.xlane.f32.xlu0 %v1375_v25  ;;  %v1378_v27 = vmax.f32 %v3752_v24, %v3756_v26 }
 0x367   : > { %1379 = vmax.xlane.f32.xlu0 %v1378_v27  ;;  %v3760_v28 = vpop.f32.mrb[4].mxu1 }
 0x368   : > { %v3762_v29 = vpop.f32.mrb[5].mxu1 }
 0x369   : > { %v3764_v30 = vpop.f32.mrb[6].mxu1  ;;  %v1381_v31 = vmax.f32 %v3760_v28, %v3762_v29 }
 0x36a   : > { %v3768_v32 = vpop.f32.mrb[7].mxu1 }
 0x36b   : > { %1382 = vmax.xlane.f32.xlu1 %v1381_v31  ;;  %v1384_v33 = vmax.f32 %v3764_v30, %v3768_v32 }
 0x36f   : > { %1385 = vmax.xlane.f32.xlu1 %v1384_v33  ;;  %v3772_v34 = vpop.f32.mrb[8].mxu1 }
 0x370   : > { %v3774_v35 = vpop.f32.mrb[9].mxu1 }
 0x371   : > { %v3776_v36 = vpop.f32.mrb[10].mxu1  ;;  %v1387_v37 = vmax.f32 %v3772_v34, %v3774_v35 }
 0x372   : > { %v3780_v40 = vpop.f32.mrb[11].mxu1 }
 0x373   : > { %1388 = vmax.xlane.f32.xlu0 %v1387_v37  ;;  %v1390_v41 = vmax.f32 %v3776_v36, %v3780_v40 }
 0x375   : > { %1391 = vmax.xlane.f32.xlu1 %v1390_v41 }
 0x377   : > { %v3784_v42 = vpop.f32.mrb[12].mxu1 }
 0x378   : > { %v3786_v44 = vpop.f32.mrb[13].mxu1 }
 0x379   : > { %v3788_v46 = vpop.f32.mrb[14].mxu1  ;;  %v1393_v47 = vmax.f32 %v3784_v42, %v3786_v44 }
 0x37a   : > { %v3792_v48 = vpop.f32.mrb[15].mxu1 }
 0x37b   : > { %1394 = vmax.xlane.f32.xlu0 %v1393_v47  ;;  %v1396_v49 = vmax.f32 %v3788_v46, %v3792_v48 }
 0x37d   : > { %1397 = vmax.xlane.f32.xlu1 %v1396_v49 }
 0x37f   : > { %v3796_v52 = vpop.f32.mrb[16].mxu1 }
 0x380   : > { %v3798_v54 = vpop.f32.mrb[17].mxu1 }
 0x381   : > { %v3800_v56 = vpop.f32.mrb[18].mxu1  ;;  %v1399_v58 = vmax.f32 %v3796_v52, %v3798_v54 }
 0x382   : > { %v3804_v60 = vpop.f32.mrb[19].mxu1 }
 0x383   : > { %1400 = vmax.xlane.f32.xlu0 %v1399_v58  ;;  %v1402_v61 = vmax.f32 %v3800_v56, %v3804_v60 }
 0x385   : > { %1403 = vmax.xlane.f32.xlu1 %v1402_v61 }
 0x387   : > { %v3808_v62 = vpop.f32.mrb[20].mxu1 }
 0x388   : > { %v3810_v0 = vpop.f32.mrb[21].mxu1 }
 0x389   : > { %v3812_v3 = vpop.f32.mrb[22].mxu1  ;;  %v1405_v4 = vmax.f32 %v3808_v62, %v3810_v0 }
 0x38a   : > { %v3817_v6 = vpop.f32.mrb[23].mxu1 }
 0x38b   : > { %1406 = vmax.xlane.f32.xlu0 %v1405_v4  ;;  %v1408_v8 = vmax.f32 %v3812_v3, %v3817_v6 }
 0x38d   : > { %1409 = vmax.xlane.f32.xlu1 %v1408_v8 }
 0x38f   : > { %v3821_v9 = vpop.f32.mrb[24].mxu1 }
 0x390   : > { %v3823_v10 = vpop.f32.mrb[25].mxu1 }
 0x391   : > { %v3825_v12 = vpop.f32.mrb[26].mxu1  ;;  %v1411_v14 = vmax.f32 %v3821_v9, %v3823_v10 }
 0x392   : > { %v3829_v15 = vpop.f32.mrb[27].mxu1 }
 0x393   : > { %1412 = vmax.xlane.f32.xlu0 %v1411_v14  ;;  %v1414_v16 = vmax.f32 %v3825_v12, %v3829_v15  ;;  %v1747_v14 = vld [vmem:[#allocation2 + $0xc8] sm:$0xff] }
 0x395   : > { %1415 = vmax.xlane.f32.xlu1 %v1414_v16 }
 0x397   : > { %v3833_v17 = vpop.f32.mrb[28].mxu1 }
 0x398   : > { %v3835_v18 = vpop.f32.mrb[29].mxu1 }
 0x399   : > { %v3837_v19 = vpop.f32.mrb[30].mxu1  ;;  %v1417_v20 = vmax.f32 %v3833_v17, %v3835_v18 }
 0x39a   : > { %v3841_v21 = vpop.f32.mrb[31].mxu1 }
 0x39b   : > { %1418 = vmax.xlane.f32.xlu0 %v1417_v20  ;;  %v1420_v25 = vmax.f32 %v3837_v19, %v3841_v21 }
 0x39d   : > { %1421 = vmax.xlane.f32.xlu1 %v1420_v25 }
 0x3ae   : > { %1781 = vrot.lane.b32.xlu1 %v3700_v57, %s3392_s26 }
 0x3b1   : > { %1779 = vrot.lane.b32.xlu0 %v3702_v59, %s3392_s26 }
 0x3b2   : > { %1783 = vrot.lane.b32.xlu1 %v3712_v1, %s3392_s26 }
 0x3b5   : > { %1787 = vrot.lane.b32.xlu0 %v3720_v7, %s3392_s26 }
 0x3b6   : > { %1785 = vrot.lane.b32.xlu1 %v3710_v63, %s3392_s26 }
 0x3b9   : > { %1791 = vrot.lane.b32.xlu0 %v3728_v13, %s3392_s26 }
 0x3ba   : > { %1789 = vrot.lane.b32.xlu1 %v3718_v5, %s3392_s26 }
 0x3be   : > { %1793 = vrot.lane.b32.xlu1 %v3726_v11, %s3392_s26 }
 0x3f0   : > { %v1377_v27 = vpop.xlane.xlu0 %1376 }
 0x3f1   : > { %v1423_v33 = vsub.f32 %v3748_v22, %v1377_v27  ;;  %v1424_v57 = vsub.f32 %v3750_v23, %v1377_v27 }
 0x3f4   : > { %v1380_v31 = vpop.xlane.xlu0 %1379 }
 0x3f5   : > { %v1425_v59 = vsub.f32 %v3752_v24, %v1380_v31  ;;  %v1426_v1 = vsub.f32 %v3756_v26, %v1380_v31 }
 0x3f7   : > { %v1455_v37 = vpack.c.bf16 %v1425_v59, %v1423_v33  ;;  %v1456_v7 = vpack.c.bf16 %v1426_v1, %v1424_v57  ;;  %v1739_v57 = vld [vmem:[#allocation2 + $0x88] sm:$0xff] }
 0x3f8   : > { %v1383_v38 = vpop.xlane.xlu1 %1382 }
 0x3f9   : > { %v1472_v63 = vmul.bf16 1069105081, %v1455_v37  ;;  %v1475_v39 = vmul.bf16 1069105081, %v1456_v7  ;;  %v1427_v11 = vsub.f32 %v3760_v28, %v1383_v38  ;;  %v1428_v13 = vsub.f32 %v3762_v29, %v1383_v38  ;;  %v1738_v29 = vld [vmem:[#allocation2 + $0x80] sm:$0xff] }
 0x3fa   : > { %v1820_v55 = vsel %vm1189_vm4, %v1738_v29, 0  ;;  %v1823_v7 = vsel %vm1189_vm4, %v1739_v57, 0 }
 0x3fb   : > { %3167 = vpow.bf16 %v1472_v63 }
 0x3fc   : > { %3169 = vpow.bf16 %v1475_v39  ;;  %v1386_v5 = vpop.xlane.xlu1 %1385 }
 0x3fd   : > { %v1429_v22 = vsub.f32 %v3764_v30, %v1386_v5  ;;  %v1430_v23 = vsub.f32 %v3768_v32, %v1386_v5 }
 0x3ff   : > { %v1457_v41 = vpack.c.bf16 %v1429_v22, %v1427_v11  ;;  %v1458_v24 = vpack.c.bf16 %v1430_v23, %v1428_v13 }
 0x400   : > { %v1389_v43 = vpop.xlane.xlu0 %1388 }
 0x401   : > { %v1478_v26 = vmul.bf16 1069105081, %v1457_v41  ;;  %v1481_v45 = vmul.bf16 1069105081, %v1458_v24  ;;  %v1431_v47 = vsub.f32 %v3772_v34, %v1389_v43  ;;  %v1432_v50 = vsub.f32 %v3774_v35, %v1389_v43 }
 0x402   : > { %v1392_v49 = vpop.xlane.xlu1 %1391 }
 0x403   : > { %3171 = vpow.bf16 %v1478_v26  ;;  %v1433_v51 = vsub.f32 %v3776_v36, %v1392_v49  ;;  %v1434_v28 = vsub.f32 %v3780_v40, %v1392_v49 }
 0x404   : > { %3173 = vpow.bf16 %v1481_v45 }
 0x405   : > { %v1459_v30 = vpack.c.bf16 %v1433_v51, %v1431_v47  ;;  %v1460_v53 = vpack.c.bf16 %v1434_v28, %v1432_v50  ;;  %v1740_v47 = vld [vmem:[#allocation2 + $0x90] sm:$0xff] }
 0x406   : > { %v3168_v32 = vpop.eup %3167 }
 0x407   : > { %v3170_v58 = vpop.eup %3169  ;;  %v1484_v61 = vmul.bf16 1069105081, %v1459_v30  ;;  %v1487_v2 = vmul.bf16 1069105081, %v1460_v53  ;;  %v1519_v4 = vunpack.c.l.bf16 %v3168_v32  ;;  %v1521_v34 = vunpack.c.h.bf16 %v3168_v32 }
 0x408   : > { %1631 = vmatprep.mubr.bf16.mxu0 %v3170_v58  ;;  %v1395_v8 = vpop.xlane.xlu0 %1394  ;;  %v1520_v35 = vunpack.c.l.bf16 %v3170_v58  ;;  %v1522_v16 = vunpack.c.h.bf16 %v3170_v58 }
 0x409   : > { %3175 = vpow.bf16 %v1484_v61  ;;  %1632 = vmatmul.mubr.bf16.vlgmr.msra.gmra.mrb[16].mxu0 %v3168_v32  ;;  %v1435_v25 = vsub.f32 %v3784_v42, %v1395_v8  ;;  %v1436_v27 = vsub.f32 %v3786_v44, %v1395_v8  ;;  %v1748_v44 = vld [vmem:[#allocation2 + $0xd0] sm:$0xff] }
 0x40a   : > { %3177 = vpow.bf16 %v1487_v2  ;;  %2809 = vmatpush3.bf16.xpose.msra.mxu0 %v1820_v55  ;;  %v1398_v36 = vpop.xlane.xlu1 %1397  ;;  %v3866_v40 = vadd.f32 %v1520_v35, %v1519_v4  ;;  %v3868_v20 = vadd.f32 %v1522_v16, %v1521_v34  ;;  %v1741_v35 = vld [vmem:[#allocation2 + $0x98] sm:$0xff] }
 0x40b   : > { %v1437_v31 = vsub.f32 %v3788_v46, %v1398_v36  ;;  %v1438_v33 = vsub.f32 %v3792_v48, %v1398_v36  ;;  %3061 = vmatprep.subr.msk.bf16.mxu0 %vm1189_vm4, %v1747_v14 }
 0x40d   : > { %v1461_v59 = vpack.c.bf16 %v1437_v31, %v1435_v25  ;;  %v1462_v1 = vpack.c.bf16 %v1438_v33, %v1436_v27 }
 0x40e   : > { %v3172_v37 = vpop.eup %3171 }
 0x40f   : > { %v3174_v38 = vpop.eup %3173  ;;  %v1490_v63 = vmul.bf16 1069105081, %v1461_v59  ;;  %v1493_v39 = vmul.bf16 1069105081, %v1462_v1  ;;  %v1525_v5 = vunpack.c.h.bf16 %v3172_v37  ;;  %v1523_v11 = vunpack.c.l.bf16 %v3172_v37 }
 0x410   : > { %1639 = vmatprep.mubr.bf16.mxu0 %v3174_v38  ;;  %v1401_v42 = vpop.xlane.xlu0 %1400  ;;  %v1526_v13 = vunpack.c.h.bf16 %v3174_v38  ;;  %v1524_v46 = vunpack.c.l.bf16 %v3174_v38 }
 0x411   : > { %3179 = vpow.bf16 %v1490_v63  ;;  %1640 = vmatmul.mubr.bf16.gmra.mrb[20].mxu0 %v3172_v37  ;;  %v1439_v41 = vsub.f32 %v3796_v52, %v1401_v42  ;;  %v1440_v24 = vsub.f32 %v3798_v54, %v1401_v42  ;;  %v1826_v54 = vsel %vm1189_vm4, %v1740_v47, 0  ;;  %v1742_v42 = vld [vmem:[#allocation2 + $0xa0] sm:$0xff] }
 0x412   : > { %3181 = vpow.bf16 %v1493_v39  ;;  %2811 = vmatpush3.bf16.xpose.msra.mxu0 %v1823_v7  ;;  %v1404_v48 = vpop.xlane.xlu1 %1403  ;;  %v3876_v22 = vadd.f32 %v1526_v13, %v1525_v5  ;;  %v3878_v23 = vadd.f32 %v1524_v46, %v1523_v11 }
 0x413   : > { %v1441_v43 = vsub.f32 %v3800_v56, %v1404_v48  ;;  %v1442_v26 = vsub.f32 %v3804_v60, %v1404_v48  ;;  %3062 = vmatprep.subr.msk.bf16.mxu0 %vm1189_vm4, %v1748_v44  ;;  %v1749_v56 = vld [vmem:[#allocation2 + $0xd8] sm:$0xff] }
 0x414   : > { %v3176_v45 = vpop.eup %3175 }
 0x415   : > { %v3178_v49 = vpop.eup %3177  ;;  %v1463_v50 = vpack.c.bf16 %v1441_v43, %v1439_v41  ;;  %v1464_v51 = vpack.c.bf16 %v1442_v26, %v1440_v24  ;;  %v1529_v28 = vunpack.c.h.bf16 %v3176_v45  ;;  %v1527_v29 = vunpack.c.l.bf16 %v3176_v45 }
 0x416   : > { %1647 = vmatprep.mubr.bf16.mxu0 %v3178_v49  ;;  %v1530_v30 = vunpack.c.h.bf16 %v3178_v49  ;;  %v1528_v53 = vunpack.c.l.bf16 %v3178_v49 }
 0x417   : > { %v1496_v32 = vmul.bf16 1069105081, %v1463_v50  ;;  %v1499_v52 = vmul.bf16 1069105081, %v1464_v51 }
 0x418   : > { %v1407_v55 = vpop.xlane.xlu0 %1406  ;;  %v3886_v58 = vadd.f32 %v1530_v30, %v1529_v28  ;;  %v3888_v60 = vadd.f32 %v1528_v53, %v1527_v29  ;;  %v1743_v53 = vld [vmem:[#allocation2 + $0xa8] sm:$0xff] }
 0x419   : > { %3183 = vpow.bf16 %v1496_v32  ;;  %1648 = vmatmul.mubr.bf16.gmra.mrb[24].mxu0 %v3176_v45  ;;  %v1443_v2 = vsub.f32 %v3808_v62, %v1407_v55  ;;  %v1444_v4 = vsub.f32 %v3810_v0, %v1407_v55  ;;  %v1829_v0 = vsel %vm1189_vm4, %v1741_v35, 0 }
 0x41a   : > { %3185 = vpow.bf16 %v1499_v52  ;;  %2813 = vmatpush3.bf16.xpose.msra.mxu0 %v1826_v54  ;;  %v1410_v61 = vpop.xlane.xlu1 %1409 }
 0x41b   : > { %v1445_v34 = vsub.f32 %v3812_v3, %v1410_v61  ;;  %v1446_v8 = vsub.f32 %v3817_v6, %v1410_v61  ;;  %3063 = vmatprep.subr.msk.bf16.mxu0 %vm1189_vm4, %v1749_v56  ;;  %v1750_v3 = vld [vmem:[#allocation2 + $0xe0] sm:$0xff] }
 0x41c   : > { %v3180_v14 = vpop.eup %3179 }
 0x41d   : > { %v3182_v16 = vpop.eup %3181  ;;  %v1465_v36 = vpack.c.bf16 %v1445_v34, %v1443_v2  ;;  %v1466_v25 = vpack.c.bf16 %v1446_v8, %v1444_v4  ;;  %v1533_v27 = vunpack.c.h.bf16 %v3180_v14  ;;  %v1531_v31 = vunpack.c.l.bf16 %v3180_v14  ;;  %v1752_v34 = vld [vmem:[#allocation2 + $0xf0] sm:$0xff] }
 0x41e   : > { %1655 = vmatprep.mubr.bf16.mxu0 %v3182_v16  ;;  %v1534_v33 = vunpack.c.h.bf16 %v3182_v16  ;;  %v1532_v57 = vunpack.c.l.bf16 %v3182_v16 }
 0x41f   : > { %v1502_v59 = vmul.bf16 1069105081, %v1465_v36  ;;  %v1505_v62 = vmul.bf16 1069105081, %v1466_v25 }
 0x420   : > { %v1413_v1 = vpop.xlane.xlu0 %1412  ;;  %v3896_v37 = vadd.f32 %v1534_v33, %v1533_v27  ;;  %v3898_v6 = vadd.f32 %v1532_v57, %v1531_v31  ;;  %v1753_v33 = vld [vmem:[#allocation2 + $0xf8] sm:$0xff] }
 0x421   : > { %3187 = vpow.bf16 %v1502_v59  ;;  %1656 = vmatmul.mubr.bf16.gmra.mrb[28].mxu0 %v3180_v14  ;;  %v1447_v38 = vsub.f32 %v3821_v9, %v1413_v1  ;;  %v1448_v63 = vsub.f32 %v3823_v10, %v1413_v1  ;;  %v1832_v10 = vsel %vm1189_vm4, %v1742_v42, 0  ;;  %v1744_v14 = vld [vmem:[#allocation2 + $0xb0] sm:$0xff] }
 0x422   : > { %3189 = vpow.bf16 %v1505_v62  ;;  %2815 = vmatpush3.bf16.xpose.msra.mxu0 %v1829_v0  ;;  %v1416_v7 = vpop.xlane.xlu1 %1415  ;;  %v1838_v31 = vsel %vm1189_vm4, %v1744_v14, 0  ;;  %v1745_v0 = vld [vmem:[#allocation2 + $0xb8] sm:$0xff] }
 0x423   : > { %v1449_v39 = vsub.f32 %v3825_v12, %v1416_v7  ;;  %v1450_v5 = vsub.f32 %v3829_v15, %v1416_v7  ;;  %3064 = vmatprep.subr.msk.bf16.mxu0 %vm1189_vm4, %v1750_v3  ;;  %v1751_v12 = vld [vmem:[#allocation2 + $0xe8] sm:$0xff] }
 0x424   : > { %v3184_v11 = vpop.eup %3183 }
 0x425   : > { %v3186_v44 = vpop.eup %3185  ;;  %v1467_v13 = vpack.c.bf16 %v1449_v39, %v1447_v38  ;;  %v1468_v46 = vpack.c.bf16 %v1450_v5, %v1448_v63  ;;  %v1537_v48 = vunpack.c.h.bf16 %v3184_v11  ;;  %v1535_v41 = vunpack.c.l.bf16 %v3184_v11 }
 0x426   : > { %1663 = vmatprep.mubr.bf16.mxu0 %v3186_v44  ;;  %v1538_v24 = vunpack.c.h.bf16 %v3186_v44  ;;  %v1536_v43 = vunpack.c.l.bf16 %v3186_v44  ;;  %v1841_v39 = vsel %vm1189_vm4, %v1745_v0, 0 }
 0x427   : > { %v1508_v26 = vmul.bf16 1069105081, %v1467_v13  ;;  %v1511_v9 = vmul.bf16 1069105081, %v1468_v46 }
 0x428   : > { %v1419_v45 = vpop.xlane.xlu0 %1418  ;;  %v3906_v47 = vadd.f32 %v1538_v24, %v1537_v48  ;;  %v3908_v15 = vadd.f32 %v1536_v43, %v1535_v41 }
 0x429   : > { %3191 = vpow.bf16 %v1508_v26  ;;  %1664 = vmatmul.mubr.bf16.gmra.mrb[32].mxu0 %v3184_v11  ;;  %v1451_v50 = vsub.f32 %v3833_v17, %v1419_v45  ;;  %v1452_v51 = vsub.f32 %v3835_v18, %v1419_v45  ;;  %v1835_v18 = vsel %vm1189_vm4, %v1743_v53, 0 }
 0x42a   : > { %3193 = vpow.bf16 %v1511_v9  ;;  %2817 = vmatpush3.bf16.xpose.msra.mxu0 %v1832_v10  ;;  %v1422_v49 = vpop.xlane.xlu1 %1421 }
 0x42b   : > { %v1453_v28 = vsub.f32 %v3837_v19, %v1422_v49  ;;  %v1454_v29 = vsub.f32 %v3841_v21, %v1422_v49  ;;  %3065 = vmatprep.subr.msk.bf16.mxu0 %vm1189_vm4, %v1751_v12  ;;  %v1763_v12 = vld [vmem:[#allocation3 + $0xc0] sm:$0xff] }
 0x42c   : > { %v3188_v30 = vpop.eup %3187  ;;  %v1780_v42 = vpop.permute.xlu0 %1779  ;;  %v1755_v49 = vld [vmem:[#allocation3 + $0x80] sm:$0xff]  ;;  %2840 = vmatprep.subr.bf16.mxu1 %v1763_v12 }
 0x42d   : > { %v3190_v32 = vpop.eup %3189  ;;  %v1469_v52 = vpack.c.bf16 %v1453_v28, %v1451_v50  ;;  %v1470_v54 = vpack.c.bf16 %v1454_v29, %v1452_v51  ;;  %v1541_v55 = vunpack.c.h.bf16 %v3188_v30  ;;  %v1539_v56 = vunpack.c.l.bf16 %v3188_v30  ;;  %v1764_v50 = vld [vmem:[#allocation3 + $0xc8] sm:$0xff]  ;;  %2841 = vmatpush3.bf16.msra.mxu1 %v1755_v49 }
 0x42e   : > { %1671 = vmatprep.mubr.bf16.mxu0 %v3190_v32  ;;  %v1542_v61 = vunpack.c.h.bf16 %v3190_v32  ;;  %v1540_v2 = vunpack.c.l.bf16 %v3190_v32  ;;  %v1782_v44 = vpop.permute.xlu1 %1781  ;;  %2842 = vmatprep.subr.bf16.mxu1 %v1764_v50  ;;  %v1756_v29 = vld [vmem:[#allocation3 + $0x88] sm:$0xff] }
 0x42f   : > { %v1514_v4 = vmul.bf16 1069105081, %v1469_v52  ;;  %v1517_v17 = vmul.bf16 1069105081, %v1470_v54  ;;  %v1757_v52 = vld [vmem:[#allocation3 + $0x90] sm:$0xff] }
 0x430   : > { %v3916_v19 = vadd.f32 %v1542_v61, %v1541_v55  ;;  %v3918_v21 = vadd.f32 %v1540_v2, %v1539_v56  ;;  %v1788_v48 = vpop.permute.xlu0 %1787  ;;  %v1766_v56 = vld [vmem:[#allocation3 + $0xd8] sm:$0xff] }
 0x431   : > { %3195 = vpow.bf16 %v1514_v4  ;;  %1672 = vmatmul.mubr.bf16.gmra.mrb[36].mxu0 %v3188_v30  ;;  %v1765_v30 = vld [vmem:[#allocation3 + $0xd0] sm:$0xff]  ;;  %2843 = vmatpush3.bf16.msra.mxu1 %v1756_v29  ;;  %v1758_v4 = vld [vmem:[#allocation3 + $0x98] sm:$0xff] }
 0x432   : > { %3197 = vpow.bf16 %v1517_v17  ;;  %2819 = vmatpush3.bf16.xpose.msra.mxu0 %v1835_v18  ;;  %v1784_v13 = vpop.permute.xlu1 %1783  ;;  %2844 = vmatprep.subr.bf16.mxu1 %v1765_v30  ;;  %v1767_v17 = vld [vmem:[#allocation3 + $0xe0] sm:$0xff] }
 0x433   : > { %3066 = vmatprep.subr.msk.bf16.mxu0 %vm1189_vm4, %v1752_v34 }
 0x434   : > { %v3192_v8 = vpop.eup %3191  ;;  %v1792_v24 = vpop.permute.xlu0 %1791 }
 0x435   : > { %v3194_v35 = vpop.eup %3193  ;;  %v1545_v16 = vunpack.c.h.bf16 %v3192_v8  ;;  %v1543_v36 = vunpack.c.l.bf16 %v3192_v8  ;;  %2845 = vmatpush3.bf16.msra.mxu1 %v1757_v52 }
 0x436   : > { %1679 = vmatprep.mubr.bf16.mxu0 %v3194_v35  ;;  %v1546_v25 = vunpack.c.h.bf16 %v3194_v35  ;;  %v1544_v27 = vunpack.c.l.bf16 %v3194_v35  ;;  %v1786_v46 = vpop.permute.xlu1 %1785  ;;  %2846 = vmatprep.subr.bf16.mxu1 %v1766_v56 }
 0x438   : > { %v3922_v57 = vadd.f32 %v1546_v25, %v1545_v16  ;;  %v3924_v59 = vadd.f32 %v1544_v27, %v1543_v36  ;;  %v1768_v16 = vld [vmem:[#allocation3 + $0xe8] sm:$0xff] }
 0x439   : > { %1680 = vmatmul.mubr.bf16.gmra.mrb[40].mxu0 %v3192_v8  ;;  %2847 = vmatpush3.bf16.msra.mxu1 %v1758_v4  ;;  %v1759_v8 = vld [vmem:[#allocation3 + $0xa0] sm:$0xff] }
 0x43a   : > { %2821 = vmatpush3.bf16.xpose.msra.mxu0 %v1838_v31  ;;  %v1790_v41 = vpop.permute.xlu1 %1789  ;;  %2848 = vmatprep.subr.bf16.mxu1 %v1767_v17 }
 0x43b   : > { %3067 = vmatprep.subr.msk.bf16.mxu0 %vm1189_vm4, %v1753_v33 }
 0x43c   : > { %v3196_v62 = vpop.eup %3195 }
 0x43d   : > { %v3198_v1 = vpop.eup %3197  ;;  %v1549_v3 = vunpack.c.h.bf16 %v3196_v62  ;;  %v1547_v7 = vunpack.c.l.bf16 %v3196_v62  ;;  %2849 = vmatpush3.bf16.msra.mxu1 %v1759_v8 }
 0x43e   : > { %1687 = vmatprep.mubr.bf16.mxu0 %v3198_v1  ;;  %v1550_v38 = vunpack.c.h.bf16 %v3198_v1  ;;  %v1548_v63 = vunpack.c.l.bf16 %v3198_v1  ;;  %v1794_v43 = vpop.permute.xlu1 %1793  ;;  %2850 = vmatprep.subr.bf16.mxu1 %v1768_v16 }
 0x440   : > { %v3928_v5 = vadd.f32 %v1550_v38, %v1549_v3  ;;  %v3930_v11 = vadd.f32 %v1548_v63, %v1547_v7 }
 0x441   : > { %1688 = vmatmul.mubr.bf16.gmra.mrb[44].mxu0 %v3196_v62 }
 0x442   : > { %2823 = vmatpush3.bf16.xpose.msra.mxu0 %v1841_v39  ;;  %2824 = vmatprep.mubr.msk.bf16.mxu0 %vm1189_vm4, %v1780_v42 }
 0x449   : > { %2825 = vmatmul.mubr.msk.bf16.vlgmr.msra.gmra.mrb[48].mxu0 %vm1189_vm4, %v1780_v42 }
 0x44a   : > { %2826 = vmatprep.mubr.msk.bf16.mxu0 %vm1189_vm4, %v1782_v44 }
 0x451   : > { %2827 = vmatmul.mubr.msk.bf16.gmra.mrb[52].mxu0 %vm1189_vm4, %v1782_v44 }
 0x452   : > { %2828 = vmatprep.mubr.msk.bf16.mxu0 %vm1189_vm4, %v1784_v13 }
 0x459   : > { %2829 = vmatmul.mubr.msk.bf16.gmra.mrb[56].mxu0 %vm1189_vm4, %v1784_v13 }
 0x45a   : > { %2830 = vmatprep.mubr.msk.bf16.mxu0 %vm1189_vm4, %v1786_v46 }
 0x461   : > { %2831 = vmatmul.mubr.msk.bf16.gmra.mrb[60].mxu0 %vm1189_vm4, %v1786_v46 }
 0x462   : > { %2832 = vmatprep.mubr.msk.bf16.mxu0 %vm1189_vm4, %v1788_v48 }
 0x469   : > { %2833 = vmatmul.mubr.msk.bf16.gmra.mrb[64].mxu0 %vm1189_vm4, %v1788_v48 }
 0x46a   : > { %2834 = vmatprep.mubr.msk.bf16.mxu0 %vm1189_vm4, %v1790_v41 }
 0x471   : > { %2835 = vmatmul.mubr.msk.bf16.gmra.mrb[68].mxu0 %vm1189_vm4, %v1790_v41 }
 0x472   : > { %2836 = vmatprep.mubr.msk.bf16.mxu0 %vm1189_vm4, %v1792_v24 }
 0x479   : > { %2837 = vmatmul.mubr.msk.bf16.gmra.mrb[72].mxu0 %vm1189_vm4, %v1792_v24 }
 0x47a   : > { %2838 = vmatprep.mubr.msk.bf16.mxu0 %vm1189_vm4, %v1794_v43 }
 0x481   : > { %2839 = vmatmul.mubr.msk.bf16.gmra.mrb[76].mxu0 %vm1189_vm4, %v1794_v43 }
 0x4dc   : > { %v2760_v26 = vpop.f32.mrb[16].mxu0 }
 0x4dd   : > { %v2761_v9 = vpop.f32.mrb[17].mxu0 }
 0x4de   : > { %v3948_v10 = vadd.f32 %v2761_v9, %v2760_v26  ;;  %v2763_v45 = vpop.f32.mrb[18].mxu0 }
 0x4df   : > { %v2764_v51 = vpop.f32.mrb[19].mxu0 }
 0x4e0   : > { %v3950_v28 = vadd.f32 %v2764_v51, %v2763_v45 }
 0x4e4   : > { %v2766_v53 = vpop.f32.mrb[20].mxu0 }
 0x4e5   : > { %v2767_v32 = vpop.f32.mrb[21].mxu0 }
 0x4e6   : > { %v3952_v54 = vadd.f32 %v2767_v32, %v2766_v53  ;;  %v2769_v55 = vpop.f32.mrb[22].mxu0 }
 0x4e7   : > { %v2770_v61 = vpop.f32.mrb[23].mxu0 }
 0x4e8   : > { %v3954_v2 = vadd.f32 %v2770_v61, %v2769_v55 }
 0x4ea   : > { %4298 = vst [vmem:[#allocation7_spill] sm:$0xff] %v3954_v2 }
 0x4ec   : > { %v2772_v18 = vpop.f32.mrb[24].mxu0 }
 0x4ed   : > { %v2773_v34 = vpop.f32.mrb[25].mxu0 }
 0x4ee   : > { %v3956_v14 = vadd.f32 %v2773_v34, %v2772_v18  ;;  %v2775_v35 = vpop.f32.mrb[26].mxu0 }
 0x4ef   : > { %v2776_v36 = vpop.f32.mrb[27].mxu0 }
 0x4f0   : > { %4299 = vst [vmem:[#allocation8_spill] sm:$0xff] %v3956_v14  ;;  %v3958_v25 = vadd.f32 %v2776_v36, %v2775_v35 }
 0x4f2   : > { %4300 = vst [vmem:[#allocation9_spill] sm:$0xff] %v3958_v25 }
 0x4f4   : > { %v2778_v27 = vpop.f32.mrb[28].mxu0 }
 0x4f5   : > { %v2779_v31 = vpop.f32.mrb[29].mxu0 }
 0x4f6   : > { %v3960_v33 = vadd.f32 %v2779_v31, %v2778_v27  ;;  %v2781_v62 = vpop.f32.mrb[30].mxu0 }
 0x4f7   : > { %v2782_v0 = vpop.f32.mrb[31].mxu0 }
 0x4f8   : > { %4301 = vst [vmem:[#allocation10_spill] sm:$0xff] %v3960_v33  ;;  %v3962_v1 = vadd.f32 %v2782_v0, %v2781_v62 }
 0x4fa   : > { %4302 = vst [vmem:[#allocation11_spill] sm:$0xff] %v3962_v1 }
 0x4fc   : > { %v2784_v3 = vpop.f32.mrb[32].mxu0 }
 0x4fd   : > { %v2785_v7 = vpop.f32.mrb[33].mxu0 }
 0x4fe   : > { %v3964_v38 = vadd.f32 %v2785_v7, %v2784_v3  ;;  %v2787_v63 = vpop.f32.mrb[34].mxu0  ;;  %v1760_v3 = vld [vmem:[#allocation3 + $0xa8] sm:$0xff] }
 0x4ff   : > { %v2788_v39 = vpop.f32.mrb[35].mxu0  ;;  %2851 = vmatpush3.bf16.msra.mxu1 %v1760_v3 }
 0x500   : > { %4303 = vst [vmem:[#allocation12_spill] sm:$0xff] %v3964_v38  ;;  %v3966_v42 = vadd.f32 %v2788_v39, %v2787_v63 }
 0x502   : > { %4304 = vst [vmem:[#allocation13_spill] sm:$0xff] %v3966_v42 }
 0x504   : > { %v2790_v44 = vpop.f32.mrb[36].mxu0 }
 0x505   : > { %v2791_v13 = vpop.f32.mrb[37].mxu0 }
 0x506   : > { %v3968_v46 = vadd.f32 %v2791_v13, %v2790_v44  ;;  %v2793_v48 = vpop.f32.mrb[38].mxu0 }
 0x507   : > { %v2794_v41 = vpop.f32.mrb[39].mxu0 }
 0x508   : > { %4305 = vst [vmem:[#allocation14_spill] sm:$0xff] %v3968_v46  ;;  %v3970_v24 = vadd.f32 %v2794_v41, %v2793_v48 }
 0x50a   : > { %4306 = vst [vmem:[#allocation15_spill] sm:$0xff] %v3970_v24 }
 0x50c   : > { %v2796_v43 = vpop.f32.mrb[40].mxu0 }
 0x50d   : > { %v2797_v26 = vpop.f32.mrb[41].mxu0 }
 0x50e   : > { %v3972_v9 = vadd.f32 %v2797_v26, %v2796_v43  ;;  %v2799_v45 = vpop.f32.mrb[42].mxu0  ;;  %v1769_v43 = vld [vmem:[#allocation3 + $0xf0] sm:$0xff] }
 0x50f   : > { %v2800_v12 = vpop.f32.mrb[43].mxu0  ;;  %v1761_v26 = vld [vmem:[#allocation3 + $0xb0] sm:$0xff]  ;;  %2852 = vmatprep.subr.bf16.mxu1 %v1769_v43 }
 0x510   : > { %4307 = vst [vmem:[#allocation16_spill] sm:$0xff] %v3972_v9  ;;  %v3974_v49 = vadd.f32 %v2800_v12, %v2799_v45  ;;  %2853 = vmatpush3.bf16.msra.mxu1 %v1761_v26 }
 0x512   : > { %4308 = vst [vmem:[#allocation17_spill] sm:$0xff] %v3974_v49 }
 0x514   : > { %v2802_v50 = vpop.f32.mrb[44].mxu0 }
 0x515   : > { %v2803_v51 = vpop.f32.mrb[45].mxu0 }
 0x516   : > { %v3976_v29 = vadd.f32 %v2803_v51, %v2802_v50  ;;  %v2805_v30 = vpop.f32.mrb[46].mxu0 }
 0x517   : > { %v2806_v53 = vpop.f32.mrb[47].mxu0 }
 0x518   : > { %4309 = vst [vmem:[#allocation18_spill] sm:$0xff] %v3976_v29  ;;  %v3978_v32 = vadd.f32 %v2806_v53, %v2805_v30 }
 0x51a   : > { %4310 = vst [vmem:[#allocation19_spill] sm:$0xff] %v3978_v32 }
 0x51c   : > { %v3980_v52 = vpop.f32.mrb[48].mxu0 }
 0x51d   : > { %v3982_v55 = vpop.f32.mrb[49].mxu0 }
 0x51e   : > { %v3984_v56 = vpop.f32.mrb[50].mxu0  ;;  %v1980_v61 = vmax.f32 %v3980_v52, %v3982_v55 }
 0x51f   : > { %v3988_v4 = vpop.f32.mrb[51].mxu0 }
 0x520   : > { %1981 = vmax.xlane.f32.xlu0 %v1980_v61  ;;  %v1983_v17 = vmax.f32 %v3984_v56, %v3988_v4  ;;  %v1770_v61 = vld [vmem:[#allocation3 + $0xf8] sm:$0xff] }
 0x521   : > { %2854 = vmatprep.subr.bf16.mxu1 %v1770_v61 }
 0x522   : > { %1984 = vmax.xlane.f32.xlu1 %v1983_v17 }
 0x524   : > { %v3992_v18 = vpop.f32.mrb[52].mxu0 }
 0x525   : > { %v3994_v34 = vpop.f32.mrb[53].mxu0 }
 0x526   : > { %v3996_v8 = vpop.f32.mrb[54].mxu0  ;;  %v1986_v35 = vmax.f32 %v3992_v18, %v3994_v34 }
 0x527   : > { %v4000_v16 = vpop.f32.mrb[55].mxu0 }
 0x528   : > { %1987 = vmax.xlane.f32.xlu0 %v1986_v35  ;;  %v1989_v36 = vmax.f32 %v3996_v8, %v4000_v16  ;;  %v1762_v35 = vld [vmem:[#allocation3 + $0xb8] sm:$0xff] }
 0x529   : > { %2855 = vmatpush3.bf16.msra.mxu1 %v1762_v35 }
 0x52c   : > { %1990 = vmax.xlane.f32.xlu0 %v1989_v36  ;;  %v4004_v27 = vpop.f32.mrb[56].mxu0 }
 0x52d   : > { %v4006_v31 = vpop.f32.mrb[57].mxu0 }
 0x52e   : > { %v4008_v62 = vpop.f32.mrb[58].mxu0  ;;  %v1992_v0 = vmax.f32 %v4004_v27, %v4006_v31 }
 0x52f   : > { %v4012_v7 = vpop.f32.mrb[59].mxu0 }
 0x530   : > { %1993 = vmax.xlane.f32.xlu0 %v1992_v0  ;;  %v1995_v63 = vmax.f32 %v4008_v62, %v4012_v7 }
 0x532   : > { %1996 = vmax.xlane.f32.xlu1 %v1995_v63 }
 0x534   : > { %v4016_v39 = vpop.f32.mrb[60].mxu0 }
 0x535   : > { %v4018_v44 = vpop.f32.mrb[61].mxu0 }
 0x536   : > { %v4020_v13 = vpop.f32.mrb[62].mxu0  ;;  %v1998_v48 = vmax.f32 %v4016_v39, %v4018_v44 }
 0x537   : > { %v4024_v41 = vpop.f32.mrb[63].mxu0 }
 0x538   : > { %1999 = vmax.xlane.f32.xlu0 %v1998_v48  ;;  %v2001_v45 = vmax.f32 %v4020_v13, %v4024_v41 }
 0x53a   : > { %2002 = vmax.xlane.f32.xlu1 %v2001_v45 }
 0x53c   : > { %v4028_v12 = vpop.f32.mrb[64].mxu0 }
 0x53d   : > { %v4030_v50 = vpop.f32.mrb[65].mxu0 }
 0x53e   : > { %v4032_v51 = vpop.f32.mrb[66].mxu0  ;;  %v2004_v30 = vmax.f32 %v4028_v12, %v4030_v50 }
 0x53f   : > { %v4036_v53 = vpop.f32.mrb[67].mxu0 }
 0x540   : > { %2005 = vmax.xlane.f32.xlu0 %v2004_v30  ;;  %v2007_v17 = vmax.f32 %v4032_v51, %v4036_v53 }
 0x542   : > { %2008 = vmax.xlane.f32.xlu1 %v2007_v17 }
 0x544   : > { %v4040_v36 = vpop.f32.mrb[68].mxu0 }
 0x545   : > { %v4042_v0 = vpop.f32.mrb[69].mxu0 }
 0x546   : > { %v4044_v3 = vpop.f32.mrb[70].mxu0  ;;  %v2010_v63 = vmax.f32 %v4040_v36, %v4042_v0 }
 0x547   : > { %v4048_v48 = vpop.f32.mrb[71].mxu0 }
 0x548   : > { %2011 = vmax.xlane.f32.xlu0 %v2010_v63  ;;  %v2013_v43 = vmax.f32 %v4044_v3, %v4048_v48 }
 0x54a   : > { %2014 = vmax.xlane.f32.xlu1 %v2013_v43 }
 0x54c   : > { %v4052_v26 = vpop.f32.mrb[72].mxu0 }
 0x54d   : > { %v4054_v45 = vpop.f32.mrb[73].mxu0 }
 0x54e   : > { %v4056_v30 = vpop.f32.mrb[74].mxu0  ;;  %v2016_v61 = vmax.f32 %v4052_v26, %v4054_v45 }
 0x54f   : > { %v4060_v17 = vpop.f32.mrb[75].mxu0 }
 0x550   : > { %2017 = vmax.xlane.f32.xlu0 %v2016_v61  ;;  %v2019_v35 = vmax.f32 %v4056_v30, %v4060_v17  ;;  %v4294_v61 = vmov 0.0  }
 0x551   : > { %3028 = vmatprep.subr.bf16.mxu0 %v4294_v61  ;;  %3008 = vmatprep.subr.bf16.mxu1 %v4294_v61 }
 0x552   : > { %2020 = vmax.xlane.f32.xlu1 %v2019_v35 }
 0x554   : > { %v4064_v63 = vpop.f32.mrb[76].mxu0 }
 0x555   : > { %v4066_v32 = vpop.f32.mrb[77].mxu0 }
 0x556   : > { %v4068_v43 = vpop.f32.mrb[78].mxu0  ;;  %v2022_v29 = vmax.f32 %v4064_v63, %v4066_v32 }
 0x557   : > { %v4072_v49 = vpop.f32.mrb[79].mxu0 }
 0x558   : > { %2023 = vmax.xlane.f32.xlu0 %v2022_v29  ;;  %v2025_v9 = vmax.f32 %v4068_v43, %v4072_v49 }
 0x55a   : > { %2026 = vmax.xlane.f32.xlu1 %v2025_v9 }
 0x55c   : > { %1552 = vadd.xlane.f32.xlu0 %v3866_v40 }
 0x55e   : > { %1555 = vadd.xlane.f32.xlu1 %v3868_v20 }
 0x5ad   : > { %v1982_v35 = vpop.xlane.xlu0 %1981 }
 0x5ae   : > { %v2028_v46 = vsub.f32 %v3980_v52, %v1982_v35  ;;  %v2029_v42 = vsub.f32 %v3982_v55, %v1982_v35 }
 0x5af   : > { %v1985_v24 = vpop.xlane.xlu1 %1984 }
 0x5b0   : > { %v2030_v29 = vsub.f32 %v3984_v56, %v1985_v24  ;;  %v2031_v38 = vsub.f32 %v3988_v4, %v1985_v24 }
 0x5b2   : > { %v2060_v9 = vpack.c.bf16 %v2030_v29, %v2028_v46  ;;  %v2061_v1 = vpack.c.bf16 %v2031_v38, %v2029_v42 }
 0x5b4   : > { %v2077_v40 = vmul.bf16 1069105081, %v2060_v9  ;;  %v2080_v33 = vmul.bf16 1069105081, %v2061_v1 }
 0x5b5   : > { %v1988_v20 = vpop.xlane.xlu0 %1987 }
 0x5b6   : > { %3199 = vpow.bf16 %v2077_v40  ;;  %v2032_v61 = vsub.f32 %v3992_v18, %v1988_v20  ;;  %v2033_v14 = vsub.f32 %v3994_v34, %v1988_v20 }
 0x5b7   : > { %3201 = vpow.bf16 %v2080_v33 }
 0x5b9   : > { %v1991_v25 = vpop.xlane.xlu0 %1990 }
 0x5ba   : > { %v2034_v52 = vsub.f32 %v3996_v8, %v1991_v25  ;;  %v2035_v55 = vsub.f32 %v4000_v16, %v1991_v25 }
 0x5bc   : > { %v2062_v35 = vpack.c.bf16 %v2034_v52, %v2032_v61  ;;  %v2063_v56 = vpack.c.bf16 %v2035_v55, %v2033_v14 }
 0x5bd   : > { %v1994_v2 = vpop.xlane.xlu0 %1993 }
 0x5be   : > { %v2083_v24 = vmul.bf16 1069105081, %v2062_v35  ;;  %v2086_v46 = vmul.bf16 1069105081, %v2063_v56  ;;  %v2036_v38 = vsub.f32 %v4004_v27, %v1994_v2  ;;  %v2037_v33 = vsub.f32 %v4006_v31, %v1994_v2 }
 0x5bf   : > { %v1997_v1 = vpop.xlane.xlu1 %1996 }
 0x5c0   : > { %3203 = vpow.bf16 %v2083_v24  ;;  %v2038_v42 = vsub.f32 %v4008_v62, %v1997_v1  ;;  %v2039_v4 = vsub.f32 %v4012_v7, %v1997_v1 }
 0x5c1   : > { %v3200_v18 = vpop.eup %3199  ;;  %3205 = vpow.bf16 %v2086_v46 }
 0x5c2   : > { %v3202_v34 = vpop.eup %3201  ;;  %v2064_v8 = vpack.c.bf16 %v2038_v42, %v2036_v38  ;;  %v2065_v25 = vpack.c.bf16 %v2039_v4, %v2037_v33  ;;  %v2126_v16 = vunpack.c.h.bf16 %v3200_v18  ;;  %v2124_v14 = vunpack.c.l.bf16 %v3200_v18 }
 0x5c3   : > { %2236 = vmatprep.mubr.bf16.mxu1 %v3202_v34  ;;  %v2127_v61 = vunpack.c.h.bf16 %v3202_v34  ;;  %v2125_v29 = vunpack.c.l.bf16 %v3202_v34 }
 0x5c4   : > { %v2089_v9 = vmul.bf16 1069105081, %v2064_v8  ;;  %v2092_v27 = vmul.bf16 1069105081, %v2065_v25  ;;  %2237 = vmatmul.mubr.bf16.vlgmr.msra.gmra.mrb[32].mxu1 %v3200_v18 }
 0x5c5   : > { %v2000_v40 = vpop.xlane.xlu0 %1999  ;;  %v2159_v20 = vadd.f32 %v2127_v61, %v2126_v16  ;;  %v2156_v2 = vadd.f32 %v2125_v29, %v2124_v14 }
 0x5c6   : > { %3207 = vpow.bf16 %v2089_v9  ;;  %v2040_v62 = vsub.f32 %v4016_v39, %v2000_v40  ;;  %v2041_v7 = vsub.f32 %v4018_v44, %v2000_v40 }
 0x5c7   : > { %3209 = vpow.bf16 %v2092_v27  ;;  %2160 = vadd.xlane.f32.xlu1 %v2159_v20  ;;  %2157 = vadd.xlane.f32.xlu0 %v2156_v2  ;;  %v2003_v31 = vpop.xlane.xlu1 %2002 }
 0x5c8   : > { %v2042_v52 = vsub.f32 %v4020_v13, %v2003_v31  ;;  %v2043_v55 = vsub.f32 %v4024_v41, %v2003_v31 }
 0x5ca   : > { %v2066_v35 = vpack.c.bf16 %v2042_v52, %v2040_v62  ;;  %v2067_v56 = vpack.c.bf16 %v2043_v55, %v2041_v7 }
 0x5cb   : > { %v3204_v24 = vpop.eup %3203  ;;  %1561 = vadd.xlane.f32.xlu1 %v3876_v22  ;;  %1558 = vadd.xlane.f32.xlu0 %v3878_v23 }
 0x5cc   : > { %v3206_v46 = vpop.eup %3205  ;;  %v2095_v38 = vmul.bf16 1069105081, %v2066_v35  ;;  %v2098_v1 = vmul.bf16 1069105081, %v2067_v56  ;;  %v2130_v33 = vunpack.c.h.bf16 %v3204_v24  ;;  %v2128_v42 = vunpack.c.l.bf16 %v3204_v24 }
 0x5cd   : > { %2244 = vmatprep.mubr.bf16.mxu1 %v3206_v46  ;;  %v2006_v39 = vpop.xlane.xlu0 %2005  ;;  %v2131_v4 = vunpack.c.h.bf16 %v3206_v46  ;;  %v2129_v44 = vunpack.c.l.bf16 %v3206_v46 }
 0x5ce   : > { %3211 = vpow.bf16 %v2095_v38  ;;  %2245 = vmatmul.mubr.bf16.gmra.mrb[36].mxu1 %v3204_v24  ;;  %v2044_v34 = vsub.f32 %v4028_v12, %v2006_v39  ;;  %v2045_v22 = vsub.f32 %v4030_v50, %v2006_v39 }
 0x5cf   : > { %3213 = vpow.bf16 %v2098_v1  ;;  %v2009_v13 = vpop.xlane.xlu1 %2008  ;;  %v2165_v41 = vadd.f32 %v2131_v4, %v2130_v33  ;;  %v2162_v18 = vadd.f32 %v2129_v44, %v2128_v42 }
 0x5d0   : > { %v2046_v23 = vsub.f32 %v4032_v51, %v2009_v13  ;;  %v2047_v8 = vsub.f32 %v4036_v53, %v2009_v13 }
 0x5d1   : > { %v3208_v25 = vpop.eup %3207  ;;  %2166 = vadd.xlane.f32.xlu1 %v2165_v41  ;;  %2163 = vadd.xlane.f32.xlu0 %v2162_v18 }
 0x5d2   : > { %v3210_v16 = vpop.eup %3209  ;;  %v2068_v14 = vpack.c.bf16 %v2046_v23, %v2044_v34  ;;  %v2069_v61 = vpack.c.bf16 %v2047_v8, %v2045_v22  ;;  %v2134_v29 = vunpack.c.h.bf16 %v3208_v25  ;;  %v2132_v9 = vunpack.c.l.bf16 %v3208_v25 }
 0x5d3   : > { %2252 = vmatprep.mubr.bf16.mxu1 %v3210_v16  ;;  %v2135_v27 = vunpack.c.h.bf16 %v3210_v16  ;;  %v2133_v40 = vunpack.c.l.bf16 %v3210_v16 }
 0x5d4   : > { %v2101_v20 = vmul.bf16 1069105081, %v2068_v14  ;;  %v2104_v2 = vmul.bf16 1069105081, %v2069_v61 }
 0x5d5   : > { %1567 = vadd.xlane.f32.xlu1 %v3886_v58  ;;  %1564 = vadd.xlane.f32.xlu0 %v3888_v60  ;;  %v2012_v12 = vpop.xlane.xlu0 %2011  ;;  %v2171_v50 = vadd.f32 %v2135_v27, %v2134_v29  ;;  %v2168_v51 = vadd.f32 %v2133_v40, %v2132_v9 }
 0x5d6   : > { %3215 = vpow.bf16 %v2101_v20  ;;  %2253 = vmatmul.mubr.bf16.gmra.mrb[40].mxu1 %v3208_v25  ;;  %v2048_v31 = vsub.f32 %v4040_v36, %v2012_v12  ;;  %v2049_v62 = vsub.f32 %v4042_v0, %v2012_v12 }
 0x5d7   : > { %3217 = vpow.bf16 %v2104_v2  ;;  %v2015_v53 = vpop.xlane.xlu1 %2014 }
 0x5d8   : > { %v2050_v7 = vsub.f32 %v4044_v3, %v2015_v53  ;;  %v2051_v52 = vsub.f32 %v4048_v48, %v2015_v53 }
 0x5d9   : > { %v3212_v55 = vpop.eup %3211  ;;  %2172 = vadd.xlane.f32.xlu1 %v2171_v50  ;;  %2169 = vadd.xlane.f32.xlu0 %v2168_v51 }
 0x5da   : > { %v3214_v58 = vpop.eup %3213  ;;  %v2070_v60 = vpack.c.bf16 %v2050_v7, %v2048_v31  ;;  %v2071_v35 = vpack.c.bf16 %v2051_v52, %v2049_v62  ;;  %v2138_v56 = vunpack.c.h.bf16 %v3212_v55  ;;  %v2136_v24 = vunpack.c.l.bf16 %v3212_v55 }
 0x5db   : > { %2260 = vmatprep.mubr.bf16.mxu1 %v3214_v58  ;;  %v2139_v46 = vunpack.c.h.bf16 %v3214_v58  ;;  %v2137_v38 = vunpack.c.l.bf16 %v3214_v58 }
 0x5dc   : > { %v2107_v1 = vmul.bf16 1069105081, %v2070_v60  ;;  %v2110_v33 = vmul.bf16 1069105081, %v2071_v35 }
 0x5dd   : > { %1573 = vadd.xlane.f32.xlu1 %v3896_v37  ;;  %1570 = vadd.xlane.f32.xlu0 %v3898_v6  ;;  %v2018_v36 = vpop.xlane.xlu0 %2017  ;;  %v2177_v0 = vadd.f32 %v2139_v46, %v2138_v56  ;;  %v2174_v3 = vadd.f32 %v2137_v38, %v2136_v24 }
 0x5de   : > { %3219 = vpow.bf16 %v2107_v1  ;;  %2261 = vmatmul.mubr.bf16.gmra.mrb[44].mxu1 %v3212_v55  ;;  %v2052_v42 = vsub.f32 %v4052_v26, %v2018_v36  ;;  %v2053_v39 = vsub.f32 %v4054_v45, %v2018_v36 }
 0x5df   : > { %3221 = vpow.bf16 %v2110_v33  ;;  %v2021_v48 = vpop.xlane.xlu1 %2020 }
 0x5e0   : > { %v2054_v4 = vsub.f32 %v4056_v30, %v2021_v48  ;;  %v2055_v44 = vsub.f32 %v4060_v17, %v2021_v48 }
 0x5e1   : > { %v3216_v13 = vpop.eup %3215  ;;  %2178 = vadd.xlane.f32.xlu1 %v2177_v0  ;;  %2175 = vadd.xlane.f32.xlu0 %v2174_v3 }
 0x5e2   : > { %v3218_v37 = vpop.eup %3217  ;;  %v2072_v6 = vpack.c.bf16 %v2054_v4, %v2052_v42  ;;  %v2073_v41 = vpack.c.bf16 %v2055_v44, %v2053_v39  ;;  %v2142_v18 = vunpack.c.h.bf16 %v3216_v13  ;;  %v2140_v34 = vunpack.c.l.bf16 %v3216_v13 }
 0x5e3   : > { %2268 = vmatprep.mubr.bf16.mxu1 %v3218_v37  ;;  %v2143_v22 = vunpack.c.h.bf16 %v3218_v37  ;;  %v2141_v23 = vunpack.c.l.bf16 %v3218_v37 }
 0x5e4   : > { %v2113_v8 = vmul.bf16 1069105081, %v2072_v6  ;;  %v2116_v25 = vmul.bf16 1069105081, %v2073_v41  ;;  %v4312_v41 = vld [vmem:[#allocation7_spill] sm:$0xff] }
 0x5e5   : > { %1579 = vadd.xlane.f32.xlu1 %v3906_v47  ;;  %1576 = vadd.xlane.f32.xlu0 %v3908_v15  ;;  %v2024_v26 = vpop.xlane.xlu0 %2023  ;;  %v2183_v45 = vadd.f32 %v2143_v22, %v2142_v18  ;;  %v2180_v30 = vadd.f32 %v2141_v23, %v2140_v34 }
 0x5e6   : > { %3223 = vpow.bf16 %v2113_v8  ;;  %2269 = vmatmul.mubr.bf16.gmra.mrb[48].mxu1 %v3216_v13  ;;  %v2056_v16 = vsub.f32 %v4064_v63, %v2024_v26  ;;  %v2057_v14 = vsub.f32 %v4066_v32, %v2024_v26 }
 0x5e7   : > { %3225 = vpow.bf16 %v2116_v25  ;;  %v2027_v17 = vpop.xlane.xlu1 %2026 }
 0x5e8   : > { %v2058_v61 = vsub.f32 %v4068_v43, %v2027_v17  ;;  %v2059_v29 = vsub.f32 %v4072_v49, %v2027_v17 }
 0x5e9   : > { %v3220_v9 = vpop.eup %3219  ;;  %2184 = vadd.xlane.f32.xlu1 %v2183_v45  ;;  %2181 = vadd.xlane.f32.xlu0 %v2180_v30  ;;  %v1553_v47 = vpop.xlane.xlu0 %1552 }
 0x5ea   : > { %v3222_v15 = vpop.eup %3221  ;;  %v2074_v27 = vpack.c.bf16 %v2058_v61, %v2056_v16  ;;  %v2075_v40 = vpack.c.bf16 %v2059_v29, %v2057_v14  ;;  %3227 = vrcp.f32 %v1553_v47  ;;  %v2146_v20 = vunpack.c.h.bf16 %v3220_v9  ;;  %v4313_v16 = vld [vmem:[#allocation8_spill] sm:$0xff]  ;;  %v4314_v61 = vld [vmem:[#allocation9_spill] sm:$0xff] }
 0x5eb   : > { %2276 = vmatprep.mubr.bf16.mxu1 %v3222_v15  ;;  %v1556_v2 = vpop.xlane.xlu1 %1555  ;;  %v2147_v12 = vunpack.c.h.bf16 %v3222_v15  ;;  %v2144_v50 = vunpack.c.l.bf16 %v3220_v9  ;;  %v2145_v63 = vunpack.c.l.bf16 %v3222_v15 }
 0x5ec   : > { %v2119_v51 = vmul.bf16 1069105081, %v2074_v27  ;;  %v2122_v32 = vmul.bf16 1069105081, %v2075_v40  ;;  %3229 = vrcp.f32 %v1556_v2 }
 0x5ed   : > { %1585 = vadd.xlane.f32.xlu1 %v3916_v19  ;;  %1582 = vadd.xlane.f32.xlu0 %v3918_v21  ;;  %v2189_v49 = vadd.f32 %v2147_v12, %v2146_v20  ;;  %v2186_v43 = vadd.f32 %v2145_v63, %v2144_v50  ;;  %v4315_v50 = vld [vmem:[#allocation10_spill] sm:$0xff] }
 0x5ee   : > { %3231 = vpow.bf16 %v2119_v51  ;;  %2277 = vmatmul.mubr.bf16.gmra.mrb[52].mxu1 %v3220_v9  ;;  %v4316_v51 = vld [vmem:[#allocation11_spill] sm:$0xff] }
 0x5ef   : > { %3233 = vpow.bf16 %v2122_v32 }
 0x5f1   : > { %v3224_v53 = vpop.eup %3223  ;;  %2190 = vadd.xlane.f32.xlu1 %v2189_v49  ;;  %2187 = vadd.xlane.f32.xlu0 %v2186_v43 }
 0x5f2   : > { %v3226_v31 = vpop.eup %3225  ;;  %v2150_v62 = vunpack.c.h.bf16 %v3224_v53  ;;  %v2148_v7 = vunpack.c.l.bf16 %v3224_v53 }
 0x5f3   : > { %2284 = vmatprep.mubr.bf16.mxu1 %v3226_v31  ;;  %v2151_v52 = vunpack.c.h.bf16 %v3226_v31  ;;  %v2149_v55 = vunpack.c.l.bf16 %v3226_v31 }
 0x5f4   : > { %v3228_v58 = vpop.eup %3227 }
 0x5f5   : > { %1591 = vadd.xlane.f32.xlu1 %v3922_v57  ;;  %1588 = vadd.xlane.f32.xlu0 %v3924_v59  ;;  %v2195_v19 = vadd.f32 %v2151_v52, %v2150_v62  ;;  %v2192_v21 = vadd.f32 %v2149_v55, %v2148_v7  ;;  %v1712_v35 = vmul.f32 %v3228_v58, %v3948_v10  ;;  %v4317_v58 = vld [vmem:[#allocation12_spill] sm:$0xff] }
 0x5f6   : > { %v3230_v60 = vpop.eup %3229  ;;  %2285 = vmatmul.mubr.bf16.gmra.mrb[56].mxu1 %v3224_v53 }
 0x5f7   : > { %v1713_v56 = vmul.f32 %v3230_v60, %v3950_v28  ;;  %v4311_v28 = vmov 0.0  }
 0x5f8   : > { %3044 = vmatprep.mubr.msk.bf16.mxu0 %vm3394_vm6, %v4311_v28 }
 0x5f9   : > { %v3232_v24 = vpop.eup %3231  ;;  %2196 = vadd.xlane.f32.xlu1 %v2195_v19  ;;  %2193 = vadd.xlane.f32.xlu0 %v2192_v21  ;;  %v1729_v46 = vpack.c.bf16 %v1713_v56, %v1712_v35  ;;  %v4318_v21 = vld [vmem:[#allocation13_spill] sm:$0xff] }
 0x5fa   : > { %v3234_v38 = vpop.eup %3233  ;;  %v2154_v1 = vunpack.c.h.bf16 %v3232_v24  ;;  %v2152_v33 = vunpack.c.l.bf16 %v3232_v24 }
 0x5fb   : > { %2292 = vmatprep.mubr.bf16.mxu1 %v3234_v38  ;;  %v2414_v57 = vsel %vm1189_vm4, %v1729_v46, 0  ;;  %v2155_v36 = vunpack.c.h.bf16 %v3234_v38  ;;  %v2153_v59 = vunpack.c.l.bf16 %v3234_v38 }
 0x5fc   : > { %3029 = vmatpush3.bf16.xpose.msra.mxu0 %v2414_v57 }
 0x5fd   : > { %1597 = vadd.xlane.f32.xlu1 %v3928_v5  ;;  %1594 = vadd.xlane.f32.xlu0 %v3930_v11  ;;  %v2201_v10 = vadd.f32 %v2155_v36, %v2154_v1  ;;  %v2198_v0 = vadd.f32 %v2153_v59, %v2152_v33  ;;  %v4319_v36 = vld [vmem:[#allocation14_spill] sm:$0xff] }
 0x5fe   : > { %2293 = vmatmul.mubr.bf16.gmra.mrb[60].mxu1 %v3232_v24  ;;  %3030 = vmatprep.subr.bf16.mxu0 %v4311_v28 }
 0x5ff   : > { %3024 = vmatprep.mubr.msk.bf16.mxu1 %vm3394_vm6, %v4311_v28 }
 0x601   : > { %2202 = vadd.xlane.f32.xlu1 %v2201_v10  ;;  %2199 = vadd.xlane.f32.xlu0 %v2198_v0  ;;  %v4320_v10 = vld [vmem:[#allocation15_spill] sm:$0xff] }
 0x654   : > { %v4130_v3 = vpop.xlane.xlu0 %2157  ;;  %v4132_v48 = vpop.xlane.xlu1 %2160 }
 0x658   : > { %v1559_v42 = vpop.xlane.xlu0 %1558  ;;  %v1562_v39 = vpop.xlane.xlu1 %1561 }
 0x659   : > { %3235 = vrcp.f32 %v1559_v42 }
 0x65a   : > { %3237 = vrcp.f32 %v1562_v39 }
 0x65e   : > { %v4136_v5 = vpop.xlane.xlu0 %2163  ;;  %v4138_v11 = vpop.xlane.xlu1 %2166 }
 0x662   : > { %v1565_v4 = vpop.xlane.xlu0 %1564  ;;  %v1568_v44 = vpop.xlane.xlu1 %1567 }
 0x663   : > { %v3236_v13 = vpop.eup %3235  ;;  %3239 = vrcp.f32 %v1565_v4 }
 0x664   : > { %v3238_v37 = vpop.eup %3237  ;;  %3241 = vrcp.f32 %v1568_v44  ;;  %v1714_v6 = vmul.f32 %v3236_v13, %v3952_v54 }
 0x665   : > { %v1715_v18 = vmul.f32 %v3238_v37, %v4312_v41 }
 0x666   : > { %v4142_v34 = vpop.xlane.xlu0 %2169  ;;  %v4144_v22 = vpop.xlane.xlu1 %2172 }
 0x667   : > { %v1730_v23 = vpack.c.bf16 %v1715_v18, %v1714_v6  ;;  %v4321_v6 = vld [vmem:[#allocation16_spill] sm:$0xff]  ;;  %v4322_v18 = vld [vmem:[#allocation17_spill] sm:$0xff] }
 0x669   : > { %v2417_v8 = vsel %vm1189_vm4, %v1730_v23, 0 }
 0x66a   : > { %3031 = vmatpush3.bf16.xpose.msra.mxu0 %v2417_v8  ;;  %v1571_v25 = vpop.xlane.xlu0 %1570  ;;  %v1574_v26 = vpop.xlane.xlu1 %1573 }
 0x66b   : > { %3243 = vrcp.f32 %v1571_v25  ;;  %3032 = vmatprep.subr.bf16.mxu0 %v4311_v28 }
 0x66c   : > { %3245 = vrcp.f32 %v1574_v26 }
 0x66d   : > { %v3240_v45 = vpop.eup %3239 }
 0x66e   : > { %v3242_v30 = vpop.eup %3241  ;;  %v4148_v17 = vpop.xlane.xlu0 %2175  ;;  %v1716_v14 = vmul.f32 %v3240_v45, %v4313_v16 }
 0x66f   : > { %v4150_v54 = vpop.xlane.xlu1 %2178  ;;  %v1717_v29 = vmul.f32 %v3242_v30, %v4314_v61  ;;  %v4323_v30 = vld [vmem:[#allocation18_spill] sm:$0xff]  ;;  %v4324_v61 = vld [vmem:[#allocation19_spill] sm:$0xff] }
 0x671   : > { %v1731_v9 = vpack.c.bf16 %v1717_v29, %v1716_v14 }
 0x672   : > { %v1577_v47 = vpop.xlane.xlu0 %1576 }
 0x673   : > { %v1580_v15 = vpop.xlane.xlu1 %1579  ;;  %3247 = vrcp.f32 %v1577_v47  ;;  %v2420_v27 = vsel %vm1189_vm4, %v1731_v9, 0 }
 0x674   : > { %3249 = vrcp.f32 %v1580_v15  ;;  %3033 = vmatpush3.bf16.xpose.msra.mxu0 %v2420_v27 }
 0x675   : > { %v3244_v40 = vpop.eup %3243  ;;  %3034 = vmatprep.subr.bf16.mxu0 %v4311_v28 }
 0x676   : > { %v3246_v20 = vpop.eup %3245  ;;  %v4156_v2 = vpop.xlane.xlu0 %2181  ;;  %v1718_v63 = vmul.f32 %v3244_v40, %v4315_v50 }
 0x677   : > { %v4158_v12 = vpop.xlane.xlu1 %2184  ;;  %v1719_v32 = vmul.f32 %v3246_v20, %v4316_v51 }
 0x679   : > { %v1732_v49 = vpack.c.bf16 %v1719_v32, %v1718_v63 }
 0x67a   : > { %v1583_v43 = vpop.xlane.xlu0 %1582 }
 0x67b   : > { %v1586_v53 = vpop.xlane.xlu1 %1585  ;;  %3251 = vrcp.f32 %v1583_v43  ;;  %v2423_v31 = vsel %vm1189_vm4, %v1732_v49, 0  ;;  %v1728_v49 = vld [vmem:[%s4292_s4] sm:$0xf] }
 0x67c   : > { %3253 = vrcp.f32 %v1586_v53  ;;  %3035 = vmatpush3.bf16.xpose.msra.mxu0 %v2423_v31 }
 0x67d   : > { %v3248_v62 = vpop.eup %3247  ;;  %3036 = vmatprep.subr.bf16.mxu0 %v4311_v28 }
 0x67e   : > { %v3250_v7 = vpop.eup %3249  ;;  %v4164_v52 = vpop.xlane.xlu0 %2187  ;;  %v1720_v19 = vmul.f32 %v3248_v62, %v4317_v58 }
 0x67f   : > { %v4166_v55 = vpop.xlane.xlu1 %2190  ;;  %v1721_v60 = vmul.f32 %v3250_v7, %v4318_v21 }
 0x681   : > { %v1733_v35 = vpack.c.bf16 %v1721_v60, %v1720_v19 }
 0x682   : > { %v1589_v56 = vpop.xlane.xlu0 %1588 }
 0x683   : > { %v1592_v24 = vpop.xlane.xlu1 %1591  ;;  %3255 = vrcp.f32 %v1589_v56  ;;  %v2426_v46 = vsel %vm1189_vm4, %v1733_v35, 0 }
 0x684   : > { %3257 = vrcp.f32 %v1592_v24  ;;  %3037 = vmatpush3.bf16.xpose.msra.mxu0 %v2426_v46 }
 0x685   : > { %v3252_v38 = vpop.eup %3251  ;;  %3038 = vmatprep.subr.bf16.mxu0 %v4311_v28 }
 0x686   : > { %v3254_v1 = vpop.eup %3253  ;;  %v4172_v33 = vpop.xlane.xlu0 %2193  ;;  %v1722_v59 = vmul.f32 %v3252_v38, %v4319_v36 }
 0x687   : > { %v4174_v57 = vpop.xlane.xlu1 %2196  ;;  %v1723_v0 = vmul.f32 %v3254_v1, %v4320_v10 }
 0x689   : > { %v1734_v42 = vpack.c.bf16 %v1723_v0, %v1722_v59 }
 0x68a   : > { %v1595_v39 = vpop.xlane.xlu0 %1594 }
 0x68b   : > { %v1598_v4 = vpop.xlane.xlu1 %1597  ;;  %3259 = vrcp.f32 %v1595_v39  ;;  %v2429_v44 = vsel %vm1189_vm4, %v1734_v42, 0 }
 0x68c   : > { %3261 = vrcp.f32 %v1598_v4  ;;  %3039 = vmatpush3.bf16.xpose.msra.mxu0 %v2429_v44 }
 0x68d   : > { %v3256_v13 = vpop.eup %3255  ;;  %3040 = vmatprep.subr.bf16.mxu0 %v4311_v28  ;;  %3263 = vrcp.f32 %v4130_v3 }
 0x68e   : > { %v3258_v37 = vpop.eup %3257  ;;  %v1724_v41 = vmul.f32 %v3256_v13, %v4321_v6  ;;  %3265 = vrcp.f32 %v4132_v48 }
 0x68f   : > { %v1725_v23 = vmul.f32 %v3258_v37, %v4322_v18  ;;  %3267 = vrcp.f32 %v4136_v5 }
 0x690   : > { %3269 = vrcp.f32 %v4138_v11 }
 0x691   : > { %v1735_v8 = vpack.c.bf16 %v1725_v23, %v1724_v41  ;;  %3271 = vrcp.f32 %v4142_v34 }
 0x692   : > { %3273 = vrcp.f32 %v4144_v22 }
 0x693   : > { %v2432_v25 = vsel %vm1189_vm4, %v1735_v8, 0  ;;  %3275 = vrcp.f32 %v4148_v17 }
 0x694   : > { %3041 = vmatpush3.bf16.xpose.msra.mxu0 %v2432_v25  ;;  %3277 = vrcp.f32 %v4150_v54 }
 0x695   : > { %v3260_v26 = vpop.eup %3259  ;;  %3042 = vmatprep.subr.bf16.mxu0 %v4311_v28  ;;  %3279 = vrcp.f32 %v4156_v2 }
 0x696   : > { %v3262_v45 = vpop.eup %3261  ;;  %v1726_v16 = vmul.f32 %v3260_v26, %v4323_v30  ;;  %3281 = vrcp.f32 %v4158_v12 }
 0x697   : > { %v2856_v14 = vpop.f32.mrb[32].mxu1  ;;  %v1727_v29 = vmul.f32 %v3262_v45, %v4324_v61  ;;  %v3264_v40 = vpop.eup %3263  ;;  %3283 = vrcp.f32 %v4164_v52 }
 0x698   : > { %v2857_v9 = vpop.f32.mrb[33].mxu1  ;;  %v3266_v50 = vpop.eup %3265  ;;  %3285 = vrcp.f32 %v4166_v55 }
 0x699   : > { %v2858_v47 = vadd.f32 %v2857_v9, %v2856_v14  ;;  %v2859_v15 = vpop.f32.mrb[34].mxu1  ;;  %v1736_v27 = vpack.c.bf16 %v1727_v29, %v1726_v16  ;;  %v3268_v7 = vpop.eup %3267  ;;  %3287 = vrcp.f32 %v4172_v33 }
 0x69a   : > { %v2860_v3 = vpop.f32.mrb[35].mxu1  ;;  %v3270_v19 = vpop.eup %3269  ;;  %3289 = vrcp.f32 %v4174_v57 }
 0x69b   : > { %v2861_v48 = vadd.f32 %v2860_v3, %v2859_v15  ;;  %v2435_v20 = vsel %vm1189_vm4, %v1736_v27, 0  ;;  %v2317_v63 = vmul.f32 %v3264_v40, %v2858_v47  ;;  %v3272_v22 = vpop.eup %3271 }
 0x69c   : > { %3043 = vmatpush3.bf16.xpose.msra.mxu0 %v2435_v20  ;;  %v3274_v59 = vpop.eup %3273 }
 0x69d   : > { %v2318_v51 = vmul.f32 %v3266_v50, %v2861_v48  ;;  %v3276_v37 = vpop.eup %3275 }
 0x69e   : > { %v3278_v41 = vpop.eup %3277 }
 0x69f   : > { %v2335_v32 = vpack.c.bf16 %v2318_v51, %v2317_v63  ;;  %v3280_v16 = vpop.eup %3279 }
 0x6a0   : > { %v3282_v61 = vpop.eup %3281 }
 0x6a1   : > { %v2862_v43 = vpop.f32.mrb[36].mxu1  ;;  %v2347_v53 = vsel %vm1189_vm4, %v2335_v32, 0  ;;  %v3284_v48 = vpop.eup %3283 }
 0x6a2   : > { %v2863_v31 = vpop.f32.mrb[37].mxu1  ;;  %3009 = vmatpush3.bf16.xpose.msra.mxu1 %v2347_v53  ;;  %v3286_v50 = vpop.eup %3285 }
 0x6a3   : > { %v2864_v5 = vadd.f32 %v2863_v31, %v2862_v43  ;;  %v2865_v62 = vpop.f32.mrb[38].mxu1  ;;  %3010 = vmatprep.subr.bf16.mxu1 %v4311_v28  ;;  %3045 = vmatmul.mubr.msk.bf16.vlgmr.msra.gmra.mrb[80].mxu0 %vm1189_vm4, %v1728_v49  ;;  %v2200_v32 = vpop.xlane.xlu0 %2199 }
 0x6a4   : > { %v2866_v11 = vpop.f32.mrb[39].mxu1  ;;  %v2203_v49 = vpop.xlane.xlu1 %2202  ;;  %3291 = vrcp.f32 %v2200_v32 }
 0x6a5   : > { %v2867_v58 = vadd.f32 %v2866_v11, %v2865_v62  ;;  %v2319_v21 = vmul.f32 %v3268_v7, %v2864_v5  ;;  %3293 = vrcp.f32 %v2203_v49  ;;  %v3288_v11 = vpop.eup %3287 }
 0x6a7   : > { %v2320_v60 = vmul.f32 %v3270_v19, %v2867_v58  ;;  %v3290_v58 = vpop.eup %3289 }
 0x6a9   : > { %v2336_v35 = vpack.c.bf16 %v2320_v60, %v2319_v21  ;;  %v2868_v56 = vpop.f32.mrb[40].mxu1 }
 0x6aa   : > { %v2869_v24 = vpop.f32.mrb[41].mxu1 }
 0x6ab   : > { %v2870_v34 = vadd.f32 %v2869_v24, %v2868_v56  ;;  %v2871_v46 = vpop.f32.mrb[42].mxu1  ;;  %v2350_v38 = vsel %vm1189_vm4, %v2336_v35, 0 }
 0x6ac   : > { %v2872_v1 = vpop.f32.mrb[43].mxu1  ;;  %3011 = vmatpush3.bf16.xpose.msra.mxu1 %v2350_v38 }
 0x6ad   : > { %v2873_v36 = vadd.f32 %v2872_v1, %v2871_v46  ;;  %3012 = vmatprep.subr.bf16.mxu1 %v4311_v28  ;;  %v2321_v10 = vmul.f32 %v3272_v22, %v2870_v34 }
 0x6ae   : > { %v3292_v1 = vpop.eup %3291 }
 0x6af   : > { %v2322_v0 = vmul.f32 %v3274_v59, %v2873_v36  ;;  %v3294_v36 = vpop.eup %3293 }
 0x6b1   : > { %v2337_v42 = vpack.c.bf16 %v2322_v0, %v2321_v10  ;;  %v2874_v39 = vpop.f32.mrb[44].mxu1 }
 0x6b2   : > { %v2875_v4 = vpop.f32.mrb[45].mxu1 }
 0x6b3   : > { %v2876_v17 = vadd.f32 %v2875_v4, %v2874_v39  ;;  %v2877_v44 = vpop.f32.mrb[46].mxu1  ;;  %v2353_v13 = vsel %vm1189_vm4, %v2337_v42, 0  ;;  %v2660_v39 = vld [vmem:[%s4292_s4 + $0x4] sm:$0xf] }
 0x6b4   : > { %v2878_v54 = vpop.f32.mrb[47].mxu1  ;;  %3013 = vmatpush3.bf16.xpose.msra.mxu1 %v2353_v13 }
 0x6b5   : > { %v2879_v6 = vadd.f32 %v2878_v54, %v2877_v44  ;;  %3014 = vmatprep.subr.bf16.mxu1 %v4311_v28  ;;  %v2323_v18 = vmul.f32 %v3276_v37, %v2876_v17 }
 0x6b7   : > { %v2324_v23 = vmul.f32 %v3278_v41, %v2879_v6 }
 0x6b9   : > { %v2338_v8 = vpack.c.bf16 %v2324_v23, %v2323_v18  ;;  %v2880_v25 = vpop.f32.mrb[48].mxu1 }
 0x6ba   : > { %v2881_v26 = vpop.f32.mrb[49].mxu1 }
 0x6bb   : > { %v2882_v2 = vadd.f32 %v2881_v26, %v2880_v25  ;;  %v2883_v45 = vpop.f32.mrb[50].mxu1  ;;  %v2356_v30 = vsel %vm1189_vm4, %v2338_v8, 0 }
 0x6bc   : > { %v2884_v12 = vpop.f32.mrb[51].mxu1  ;;  %3015 = vmatpush3.bf16.xpose.msra.mxu1 %v2356_v30 }
 0x6bd   : > { %v2885_v14 = vadd.f32 %v2884_v12, %v2883_v45  ;;  %3016 = vmatprep.subr.bf16.mxu1 %v4311_v28  ;;  %v2325_v29 = vmul.f32 %v3280_v16, %v2882_v2 }
 0x6bf   : > { %v2326_v9 = vmul.f32 %v3282_v61, %v2885_v14 }
 0x6c1   : > { %v2339_v47 = vpack.c.bf16 %v2326_v9, %v2325_v29  ;;  %v2886_v15 = vpop.f32.mrb[52].mxu1 }
 0x6c2   : > { %v2887_v27 = vpop.f32.mrb[53].mxu1 }
 0x6c3   : > { %v2888_v52 = vadd.f32 %v2887_v27, %v2886_v15  ;;  %v2889_v3 = vpop.f32.mrb[54].mxu1  ;;  %v2359_v40 = vsel %vm1189_vm4, %v2339_v47, 0 }
 0x6c4   : > { %v2890_v55 = vpop.f32.mrb[55].mxu1  ;;  %3017 = vmatpush3.bf16.xpose.msra.mxu1 %v2359_v40 }
 0x6c5   : > { %v2891_v20 = vadd.f32 %v2890_v55, %v2889_v3  ;;  %3018 = vmatprep.subr.bf16.mxu1 %v4311_v28  ;;  %v2327_v63 = vmul.f32 %v3284_v48, %v2888_v52 }
 0x6c7   : > { %v2328_v51 = vmul.f32 %v3286_v50, %v2891_v20 }
 0x6c9   : > { %v2340_v43 = vpack.c.bf16 %v2328_v51, %v2327_v63  ;;  %v2892_v53 = vpop.f32.mrb[56].mxu1 }
 0x6ca   : > { %v2893_v33 = vpop.f32.mrb[57].mxu1 }
 0x6cb   : > { %v2894_v31 = vadd.f32 %v2893_v33, %v2892_v53  ;;  %v2895_v5 = vpop.f32.mrb[58].mxu1  ;;  %v2362_v62 = vsel %vm1189_vm4, %v2340_v43, 0 }
 0x6cc   : > { %v2896_v57 = vpop.f32.mrb[59].mxu1  ;;  %3019 = vmatpush3.bf16.xpose.msra.mxu1 %v2362_v62 }
 0x6cd   : > { %v2897_v7 = vadd.f32 %v2896_v57, %v2895_v5  ;;  %3020 = vmatprep.subr.bf16.mxu1 %v4311_v28  ;;  %v2329_v19 = vmul.f32 %v3288_v11, %v2894_v31 }
 0x6cf   : > { %v2330_v21 = vmul.f32 %v3290_v58, %v2897_v7 }
 0x6d1   : > { %v2341_v60 = vpack.c.bf16 %v2330_v21, %v2329_v19  ;;  %v2898_v35 = vpop.f32.mrb[60].mxu1 }
 0x6d2   : > { %v2899_v56 = vpop.f32.mrb[61].mxu1 }
 0x6d3   : > { %v2900_v24 = vadd.f32 %v2899_v56, %v2898_v35  ;;  %v2901_v34 = vpop.f32.mrb[62].mxu1  ;;  %v2365_v46 = vsel %vm1189_vm4, %v2341_v60, 0 }
 0x6d4   : > { %v2902_v38 = vpop.f32.mrb[63].mxu1  ;;  %3021 = vmatpush3.bf16.xpose.msra.mxu1 %v2365_v46 }
 0x6d5   : > { %v2903_v22 = vadd.f32 %v2902_v38, %v2901_v34  ;;  %3022 = vmatprep.subr.bf16.mxu1 %v4311_v28  ;;  %v2331_v59 = vmul.f32 %v3292_v1, %v2900_v24 }
 0x6d7   : > { %v2332_v10 = vmul.f32 %v3294_v36, %v2903_v22 }
 0x6d9   : > { %v2342_v0 = vpack.c.bf16 %v2332_v10, %v2331_v59 }
 0x6db   : > { %v2368_v42 = vsel %vm1189_vm4, %v2342_v0, 0 }
 0x6dc   : > { %3023 = vmatpush3.bf16.xpose.msra.mxu1 %v2368_v42 }
 0x6e3   : > { %3025 = vmatmul.mubr.msk.bf16.vlgmr.msra.gmra.mrb[64].mxu1 %vm1189_vm4, %v2660_v39 }
 0x776   : > { %v2471_v4 = vpop.f32.mrb[80].mxu0 }
 0x777   : > { %v3046_v17 = vpop.f32.mrb[81].mxu0 }
 0x778   : > { %v2474_v44 = vpop.f32.mrb[82].mxu0 }
 0x779   : > { %v3047_v28 = vpop.f32.mrb[83].mxu0 }
 0x7b6   : > { %v2404_v13 = vpop.f32.mrb[64].mxu1 }
 0x7b7   : > { %v2472_v54 = vadd.f32 %v2471_v4, %v2404_v13  ;;  %v3026_v37 = vpop.f32.mrb[65].mxu1 }
 0x7b8   : > { %v2407_v6 = vpop.f32.mrb[66].mxu1 }
 0x7b9   : > { %v2477_v41 = vpack.c.bf16 %v2472_v54, %v2472_v54  ;;  %v3027_v18 = vpop.f32.mrb[67].mxu1 }
 0x7bb   : > { %2478 = vst [vmem:[%s231_s27] sm:$0xf] %v2477_v41 }
 0x7bc   : > { %3308 = shalt.err (!%p3305_p7)
}
 0x7bd   : > { %s3309_s12 = scalar_lea.hbm %s4231_s14, 64  ;;  %s3313_s30 = scalar_lea.hbm %s4293_s5, 256 }
 0x7be   : > { %p3310_p9 = scmp.ne.s32.totalorder %s4231_s14, %s3309_s12  ;;  %p3314_p12 = scmp.lt.u32.totalorder %s4231_s14, %s4293_s5 }
 0x7bf   : > { %p3315_p13 = scmp.lt.u32.totalorder %s3313_s30, %s3309_s12  ;;  %p3317_p1 = scmp.lt.u32.totalorder %s3309_s12, %s4231_s14 }
 0x7c0   : > { %p3311_p10 = pnand %p3310_p9, %p3477_p3 }
 0x7c1   : > { %p3316_p0 = por %p3315_p13, %p3314_p12 }
 0x7c2   : > { %p3312_p11 = pneg %p3311_p10 }
 0x7c3   : > { %p3318_p2 = por %p3317_p1, %p3316_p0 }
 0x7c5   : > { %p3319_p4 = pnand %p3318_p2, %p3312_p11 }
 0x7c7   : > { %3322 = shalt.err (!%p3319_p4)
}
 0x7c8   : > { %3068 = dma.vmem_to_hbm [thread:$0]  (%p3477_p3), %s4233_s9, 64, %s4231_s14, %s2480_s21  }
 0x7c9 PF: > { %p3074_p5 = scmp.ge.s32.totalorder %s3389_s25, 2  ;;  %s2507_s10 = sand.u32 1, %s3361_s18  }
 0x7ca   : > { %s2508_s22 = scalar_lea.sflag [#allocation5], %s2507_s10 }
 0x7cb   : > { %p3071_p6 = pnand %p3074_p5, %p3486_p8 }
 0x7cd   : > { %3356 = dma.done.wait (!%p3071_p6), %s2508_s22, 64  }
 0x7ce   : > { %3358 = vsyncadd (!%p3071_p6), %s2508_s22, 4294967232  ;;  %s18_s25 = sadd.s32 1, %s3389_s25   ;;  %s4325_s18 = smov %s3365_s19 }
 0x7cf   : > { %p15_p7 = scmp.ge.s32.totalorder %s18_s25, 6   ;;  %s4326_s19 = smov %s3369_s20 }
 0x7d0   : > { %s4327_s20 = smov %s3495_s11  ;;  %s4328_s21 = smov %s3381_s23 }
 0x7d1   : > { %s4329_s22 = smov %s3385_s24  ;;  %s4330_s23 = smov %s4333_s28 }
 0x7d2   : > { %s4331_s24 = smov %s4337_s29  ;;  %17 = sbr.rel (!%p15_p7) target bundleno = 5 (0x5), region = 85 }
 0x7d9   :  { %2513 = vsyncpa [#allocation5], 1 }
 0x7da   :  { %2515 = vsyncpa [#allocation5 + $0x1], 1 }

</bundles_post_ra>
